<compile_context>
chip_gen: v7x
topology: tpu7x:2x2x1
jax: 0.10.0
libtpu: 0.0.40
codegen_flags: <defaults>
</compile_context>

<pallas_src>
import functools
import math

import jax
import jax.numpy as jnp
from jax.experimental import pallas as pl
from jax.experimental.pallas import tpu as pltpu


def _layer_norm(x, gamma, beta, eps=1e-5):
    mu = jnp.mean(x, axis=-1, keepdims=True)
    var = jnp.mean((x - mu) ** 2, axis=-1, keepdims=True)
    return (x - mu) * jax.lax.rsqrt(var + eps) * gamma + beta


def encoder_block_kernel(x_ref,
                         ln1_g_ref, ln1_b_ref,
                         wqkv_ref, bqkv_ref,
                         wo_ref, bo_ref,
                         ln2_g_ref, ln2_b_ref,
                         w1_ref, b1_ref, w2_ref, b2_ref,
                         o_ref,
                         attn_ref,
                         *, seq_len, n_heads, batch_tile):
    S, H, BT = seq_len, n_heads, batch_tile
    E = x_ref.shape[-1]
    Dh = E // H

    x = x_ref[...].astype(jnp.float32)                          # (BT*S, E)

    # ---- LayerNorm 1 (f32, VPU) ----
    n1 = _layer_norm(x, ln1_g_ref[...], ln1_b_ref[...])

    # ---- Fused QKV projection: one bf16 MXU matmul over all BT*S rows ----
    # 1/sqrt(Dh) is already folded into the Q columns of wqkv / bqkv on the host.
    qkv = jnp.dot(n1.astype(jnp.bfloat16), wqkv_ref[...],
                  preferred_element_type=jnp.float32) + bqkv_ref[...]   # (BT*S, 3E) f32

    # ---- Self-attention per (batch, head) ----
    # TODO(synk): a head-batched einsum ('bhqd,bhkd->bhqk') needs a
    # (BT,S,H,Dh)->(BT,H,S,Dh) relayout / multi-batch-dim dot_general that Mosaic
    # does not lower reliably; per-head 2-D dots with scratch writes are used
    # instead (results land directly in the concat layout, so no lane concat).
    nt_dims = (((1,), (1,)), ((), ()))      # q @ k^T without an explicit XLU transpose
    for b in range(BT):
        rows = slice(b * S, (b + 1) * S)
        for h in range(H):
            cq = slice(h * Dh, (h + 1) * Dh)
            ck = slice(E + h * Dh, E + (h + 1) * Dh)
            cv = slice(2 * E + h * Dh, 2 * E + (h + 1) * Dh)
            q = qkv[rows, cq].astype(jnp.bfloat16)              # (S, Dh), pre-scaled
            k = qkv[rows, ck].astype(jnp.bfloat16)
            v = qkv[rows, cv].astype(jnp.bfloat16)
            s = jax.lax.dot_general(q, k, nt_dims,
                                    preferred_element_type=jnp.float32)   # (S, S) f32
            p = jnp.exp(s - jnp.max(s, axis=-1, keepdims=True))
            l = jnp.sum(p, axis=-1, keepdims=True)              # (S, 1) f32
            pv = jnp.dot(p.astype(jnp.bfloat16), v,
                         preferred_element_type=jnp.float32)    # (S, Dh) f32
            # Normalize after PV: S*Dh multiplies instead of S*S; EUP reciprocal.
            attn_ref[rows, cq] = pv * pl.reciprocal(l, approx=True)

    # ---- Output projection over all rows at once (concat-free) ----
    attn = jnp.dot(attn_ref[...].astype(jnp.bfloat16), wo_ref[...],
                   preferred_element_type=jnp.float32) + bo_ref[...]
    res1 = attn + x                                             # dropout1 = identity (eval)

    # ---- LayerNorm 2 + FFN: Linear -> GELU(exact erf) -> Linear ----
    n2 = _layer_norm(res1, ln2_g_ref[...], ln2_b_ref[...])
    h1 = jnp.dot(n2.astype(jnp.bfloat16), w1_ref[...],
                 preferred_element_type=jnp.float32) + b1_ref[...]
    h1 = 0.5 * h1 * (1.0 + jax.lax.erf(h1 * (1.0 / math.sqrt(2.0))))
    ff = jnp.dot(h1.astype(jnp.bfloat16), w2_ref[...],
                 preferred_element_type=jnp.float32) + b2_ref[...]

    o_ref[...] = (ff + res1).astype(o_ref.dtype)                # dropout2 = identity (eval)


def _prepare_kernel_operands(params, embed_dim, n_heads):
    """Fuse/transpose PyTorch-layout params into kernel operands (bf16 weights)."""
    E = embed_dim
    Dh = E // n_heads
    scale = 1.0 / math.sqrt(Dh)
    f32 = jnp.float32

    w_in = params["in_proj_weight"].astype(f32)                 # (3E, E)
    b_in = params["in_proj_bias"].astype(f32)                   # (3E,)
    wq_t = w_in[:E].T * scale                                   # fold scale into Q
    wk_t = w_in[E:2 * E].T
    wv_t = w_in[2 * E:].T
    wqkv = jnp.concatenate([wq_t, wk_t, wv_t], axis=1).astype(jnp.bfloat16)   # (E, 3E)
    bqkv = jnp.concatenate([b_in[:E] * scale, b_in[E:]]).reshape(1, 3 * E)

    return dict(
        ln1_g=params["ln1_g"].reshape(1, E).astype(f32),
        ln1_b=params["ln1_b"].reshape(1, E).astype(f32),
        wqkv=wqkv,
        bqkv=bqkv.astype(f32),
        wo=params["out_proj_weight"].astype(f32).T.astype(jnp.bfloat16),      # (E, E)
        bo=params["out_proj_bias"].reshape(1, E).astype(f32),
        ln2_g=params["ln2_g"].reshape(1, E).astype(f32),
        ln2_b=params["ln2_b"].reshape(1, E).astype(f32),
        w1=params["lin1_weight"].astype(f32).T.astype(jnp.bfloat16),          # (E, Hd)
        b1=params["lin1_bias"].reshape(1, -1).astype(f32),
        w2=params["lin2_weight"].astype(f32).T.astype(jnp.bfloat16),          # (Hd, E)
        b2=params["lin2_bias"].reshape(1, E).astype(f32),
    )


def _pick_batch_tile(batch, seq, target_rows=256):
    bt = max(1, min(batch, target_rows // max(seq, 1)))
    while batch % bt:
        bt -= 1
    return bt


def transformer_encoder_block(x, params, n_heads, *, batch_tile=None):
    B, S, E = x.shape
    assert E % n_heads == 0
    ops = _prepare_kernel_operands(params, E, n_heads)
    Hd = ops["w1"].shape[1]

    if batch_tile is None:
        # Fold several batch elements' rows into each grid step so every dense
        # matmul sees BT*S rows on the MXU and the ~0.35us/step overhead amortizes.
        batch_tile = _pick_batch_tile(B, S)
    BT = batch_tile
    assert B % BT == 0
    R = BT * S

    x2 = x.reshape(B * S, E)    # fold (batch, seq) rows on the host (pure layout)

    kernel = functools.partial(encoder_block_kernel,
                               seq_len=S, n_heads=n_heads, batch_tile=BT)

    def rep(shape):
        # Replicated (weight/bias) block: same tile every grid step (no re-DMA).
        return pl.BlockSpec(shape, lambda b: (0,) * len(shape))

    out2 = pl.pallas_call(
        kernel,
        out_shape=jax.ShapeDtypeStruct((B * S, E), x.dtype),
        grid=(B // BT,),
        in_specs=[
            pl.BlockSpec((R, E), lambda b: (b, 0)),     # x rows for this batch tile
            rep((1, E)), rep((1, E)),                   # ln1 gamma / beta
            rep((E, 3 * E)), rep((1, 3 * E)),           # fused QKV weight (bf16) / bias
            rep((E, E)), rep((1, E)),                   # out-proj weight (bf16) / bias
            rep((1, E)), rep((1, E)),                   # ln2 gamma / beta
            rep((E, Hd)), rep((1, Hd)),                 # ffn W1 (bf16) / b1
            rep((Hd, E)), rep((1, E)),                  # ffn W2 (bf16) / b2
        ],
        out_specs=pl.BlockSpec((R, E), lambda b: (b, 0)),
        scratch_shapes=[pltpu.VMEM((R, E), jnp.float32)],   # per-head attention outputs
        compiler_params=pltpu.CompilerParams(dimension_semantics=("parallel",)),
    )(x2, ops["ln1_g"], ops["ln1_b"], ops["wqkv"], ops["bqkv"],
      ops["wo"], ops["bo"], ops["ln2_g"], ops["ln2_b"],
      ops["w1"], ops["b1"], ops["w2"], ops["b2"])

    return out2.reshape(B, S, E)


def init_params(key, embed_dim, expansion_factor):
    E = embed_dim
    Hd = expansion_factor * E
    ks = jax.random.split(key, 8)

    def w(k, shape):
        return 0.02 * jax.random.normal(k, shape, jnp.float32)

    # PyTorch-layout parameters (nn.MultiheadAttention / nn.Linear / nn.LayerNorm).
    # Biases are random (PyTorch zero-inits the attention biases) purely to exercise
    # every code path in this smoke test; the forward math is unchanged.
    return {
        "ln1_g": jnp.ones((E,), jnp.float32),
        "ln1_b": jnp.zeros((E,), jnp.float32),
        "ln2_g": jnp.ones((E,), jnp.float32),
        "ln2_b": jnp.zeros((E,), jnp.float32),
        "in_proj_weight": w(ks[0], (3 * E, E)),
        "in_proj_bias": w(ks[1], (3 * E,)),
        "out_proj_weight": w(ks[2], (E, E)),
        "out_proj_bias": w(ks[3], (E,)),
        "lin1_weight": w(ks[4], (Hd, E)),
        "lin1_bias": w(ks[5], (Hd,)),
        "lin2_weight": w(ks[6], (E, Hd)),
        "lin2_bias": w(ks[7], (E,)),
    }


if __name__ == "__main__":
    B, S, E = 2, 8, 32
    n_heads = 8
    expansion_factor = 4

    key = jax.random.PRNGKey(0)
    kx, kp = jax.random.split(key)
    x = jax.random.normal(kx, (B, S, E), jnp.float32)
    params = init_params(kp, E, expansion_factor)

    out = transformer_encoder_block(x, params, n_heads)
    out = jax.block_until_ready(out)

    assert out.shape == (B, S, E)
    assert bool(jnp.all(jnp.isfinite(out)))
    print("KERNEL_OK")
</pallas_src>

<mosaic_0001>
module attributes {stable_mosaic.version = 11 : i64} {
  func.func @encoder_block_kernel(%arg0: i32, %arg1: memref<16x32xf32, #tpu.memory_space<vmem>>, %arg2: memref<1x32xf32, #tpu.memory_space<vmem>>, %arg3: memref<1x32xf32, #tpu.memory_space<vmem>>, %arg4: memref<32x96xbf16, #tpu.memory_space<vmem>>, %arg5: memref<1x96xf32, #tpu.memory_space<vmem>>, %arg6: memref<32x32xbf16, #tpu.memory_space<vmem>>, %arg7: memref<1x32xf32, #tpu.memory_space<vmem>>, %arg8: memref<1x32xf32, #tpu.memory_space<vmem>>, %arg9: memref<1x32xf32, #tpu.memory_space<vmem>>, %arg10: memref<32x128xbf16, #tpu.memory_space<vmem>>, %arg11: memref<1x128xf32, #tpu.memory_space<vmem>>, %arg12: memref<128x32xbf16, #tpu.memory_space<vmem>>, %arg13: memref<1x32xf32, #tpu.memory_space<vmem>>, %arg14: memref<16x32xf32, #tpu.memory_space<vmem>>, %arg15: memref<16x32xf32, #tpu.memory_space<vmem>>) attributes {dimension_semantics = [#tpu.dimension_semantics<parallel>], iteration_bounds = array<i64: 1>, scalar_prefetch = 0 : i64, scratch_operands = 1 : i64, tpu.core_type = #tpu.core_type<tc>, window_params = [{transform_indices = @transform_0, window_bounds = array<i64: 16, 32>}, {pipeline_mode = #tpu.pipeline_mode<synchronous>, transform_indices = @transform_1, window_bounds = array<i64: 1, 32>}, {pipeline_mode = #tpu.pipeline_mode<synchronous>, transform_indices = @transform_2, window_bounds = array<i64: 1, 32>}, {pipeline_mode = #tpu.pipeline_mode<synchronous>, transform_indices = @transform_3, window_bounds = array<i64: 32, 96>}, {pipeline_mode = #tpu.pipeline_mode<synchronous>, transform_indices = @transform_4, window_bounds = array<i64: 1, 96>}, {pipeline_mode = #tpu.pipeline_mode<synchronous>, transform_indices = @transform_5, window_bounds = array<i64: 32, 32>}, {pipeline_mode = #tpu.pipeline_mode<synchronous>, transform_indices = @transform_6, window_bounds = array<i64: 1, 32>}, {pipeline_mode = #tpu.pipeline_mode<synchronous>, transform_indices = @transform_7, window_bounds = array<i64: 1, 32>}, {pipeline_mode = #tpu.pipeline_mode<synchronous>, transform_indices = @transform_8, window_bounds = array<i64: 1, 32>}, {pipeline_mode = #tpu.pipeline_mode<synchronous>, transform_indices = @transform_9, window_bounds = array<i64: 32, 128>}, {pipeline_mode = #tpu.pipeline_mode<synchronous>, transform_indices = @transform_10, window_bounds = array<i64: 1, 128>}, {pipeline_mode = #tpu.pipeline_mode<synchronous>, transform_indices = @transform_11, window_bounds = array<i64: 128, 32>}, {pipeline_mode = #tpu.pipeline_mode<synchronous>, transform_indices = @transform_12, window_bounds = array<i64: 1, 32>}, {transform_indices = @transform_13, window_bounds = array<i64: 16, 32>}]} {
    %c0 = arith.constant 0 : index
    %c0_0 = arith.constant 0 : index
    %0 = vector.load %arg1[%c0, %c0_0] : memref<16x32xf32, #tpu.memory_space<vmem>>, vector<16x32xf32>
    %c0_1 = arith.constant 0 : index
    %c0_2 = arith.constant 0 : index
    %1 = vector.load %arg2[%c0_1, %c0_2] : memref<1x32xf32, #tpu.memory_space<vmem>>, vector<1x32xf32>
    %c0_3 = arith.constant 0 : index
    %c0_4 = arith.constant 0 : index
    %2 = vector.load %arg3[%c0_3, %c0_4] : memref<1x32xf32, #tpu.memory_space<vmem>>, vector<1x32xf32>
    %cst = arith.constant dense<0.000000e+00> : vector<16xf32>
    %3 = vector.multi_reduction <add>, %0, %cst [1] : vector<16x32xf32> to vector<16xf32>
    %4 = vector.shape_cast %3 : vector<16xf32> to vector<16x1xf32>
    %cst_5 = arith.constant 3.200000e+01 : f32
    %5 = vector.broadcast %cst_5 : f32 to vector<16x1xf32>
    %6 = arith.divf %4, %5 : vector<16x1xf32>
    %7 = vector.broadcast %6 : vector<16x1xf32> to vector<16x32xf32>
    %8 = arith.subf %0, %7 : vector<16x32xf32>
    %9 = arith.mulf %8, %8 : vector<16x32xf32>
    %cst_6 = arith.constant dense<0.000000e+00> : vector<16xf32>
    %10 = vector.multi_reduction <add>, %9, %cst_6 [1] : vector<16x32xf32> to vector<16xf32>
    %11 = vector.shape_cast %10 : vector<16xf32> to vector<16x1xf32>
    %cst_7 = arith.constant 3.200000e+01 : f32
    %12 = vector.broadcast %cst_7 : f32 to vector<16x1xf32>
    %13 = arith.divf %11, %12 : vector<16x1xf32>
    %14 = vector.broadcast %6 : vector<16x1xf32> to vector<16x32xf32>
    %15 = arith.subf %0, %14 : vector<16x32xf32>
    %cst_8 = arith.constant 9.99999974E-6 : f32
    %16 = vector.broadcast %cst_8 : f32 to vector<16x1xf32>
    %17 = arith.addf %13, %16 : vector<16x1xf32>
    %18 = math.rsqrt %17 : vector<16x1xf32>
    %19 = vector.broadcast %18 : vector<16x1xf32> to vector<16x32xf32>
    %20 = arith.mulf %15, %19 : vector<16x32xf32>
    %21 = vector.broadcast %1 : vector<1x32xf32> to vector<16x32xf32>
    %22 = arith.mulf %20, %21 : vector<16x32xf32>
    %23 = vector.broadcast %2 : vector<1x32xf32> to vector<16x32xf32>
    %24 = arith.addf %22, %23 : vector<16x32xf32>
    %25 = arith.truncf %24 : vector<16x32xf32> to vector<16x32xbf16>
    %c0_9 = arith.constant 0 : index
    %c0_10 = arith.constant 0 : index
    %26 = vector.load %arg4[%c0_9, %c0_10] : memref<32x96xbf16, #tpu.memory_space<vmem>>, vector<32x96xbf16>
    %cst_11 = arith.constant dense<0.000000e+00> : vector<16x96xf32>
    %27 = tpu.matmul %25, %26, %cst_11 {dimension_numbers = #tpu.dot_dimension_numbers<[1], [0], [0], [1], [0, 0, 1, 1], [], []>} : vector<16x32xbf16>, vector<32x96xbf16>, vector<16x96xf32> -> vector<16x96xf32>
    %c0_12 = arith.constant 0 : index
    %c0_13 = arith.constant 0 : index
    %28 = vector.load %arg5[%c0_12, %c0_13] : memref<1x96xf32, #tpu.memory_space<vmem>>, vector<1x96xf32>
    %29 = vector.broadcast %28 : vector<1x96xf32> to vector<16x96xf32>
    %30 = arith.addf %27, %29 : vector<16x96xf32>
    %31 = vector.extract_strided_slice %30 {offsets = [0, 0], sizes = [8, 4], strides = [1, 1]} : vector<16x96xf32> to vector<8x4xf32>
    %32 = arith.truncf %31 : vector<8x4xf32> to vector<8x4xbf16>
    %33 = vector.extract_strided_slice %30 {offsets = [0, 32], sizes = [8, 4], strides = [1, 1]} : vector<16x96xf32> to vector<8x4xf32>
    %34 = arith.truncf %33 : vector<8x4xf32> to vector<8x4xbf16>
    %35 = vector.extract_strided_slice %30 {offsets = [0, 64], sizes = [8, 4], strides = [1, 1]} : vector<16x96xf32> to vector<8x4xf32>
    %36 = arith.truncf %35 : vector<8x4xf32> to vector<8x4xbf16>
    %cst_14 = arith.constant dense<0.000000e+00> : vector<8x8xf32>
    %37 = tpu.matmul %32, %34, %cst_14 {dimension_numbers = #tpu.dot_dimension_numbers<[1], [1], [0], [0], [0, 0, 1, 0], [], []>} : vector<8x4xbf16>, vector<8x4xbf16>, vector<8x8xf32> -> vector<8x8xf32>
    %cst_15 = arith.constant dense<0xFF800000> : vector<8xf32>
    %38 = vector.multi_reduction <maximumf>, %37, %cst_15 [1] : vector<8x8xf32> to vector<8xf32>
    %39 = vector.shape_cast %38 : vector<8xf32> to vector<8x1xf32>
    %40 = vector.broadcast %39 : vector<8x1xf32> to vector<8x8xf32>
    %41 = arith.subf %37, %40 : vector<8x8xf32>
    %42 = math.exp %41 : vector<8x8xf32>
    %cst_16 = arith.constant dense<0.000000e+00> : vector<8xf32>
    %43 = vector.multi_reduction <add>, %42, %cst_16 [1] : vector<8x8xf32> to vector<8xf32>
    %44 = vector.shape_cast %43 : vector<8xf32> to vector<8x1xf32>
    %45 = arith.truncf %42 : vector<8x8xf32> to vector<8x8xbf16>
    %cst_17 = arith.constant dense<0.000000e+00> : vector<8x4xf32>
    %46 = tpu.matmul %45, %36, %cst_17 {dimension_numbers = #tpu.dot_dimension_numbers<[1], [0], [0], [1], [0, 0, 1, 1], [], []>} : vector<8x8xbf16>, vector<8x4xbf16>, vector<8x4xf32> -> vector<8x4xf32>
    %47 = tpu.reciprocal %44 {approx = true} : vector<8x1xf32> -> vector<8x1xf32>
    %48 = vector.broadcast %47 : vector<8x1xf32> to vector<8x4xf32>
    %49 = arith.mulf %46, %48 : vector<8x4xf32>
    %c0_18 = arith.constant 0 : index
    %c0_19 = arith.constant 0 : index
    %50 = vector.load %arg15[%c0_18, %c0_19] : memref<16x32xf32, #tpu.memory_space<vmem>>, vector<8x4xf32>
    tpu.vector_store %arg15[%c0_18, %c0_19], %49 {strides = array<i32>} : memref<16x32xf32, #tpu.memory_space<vmem>>, vector<8x4xf32>,
    %51 = vector.extract_strided_slice %30 {offsets = [0, 4], sizes = [8, 4], strides = [1, 1]} : vector<16x96xf32> to vector<8x4xf32>
    %52 = arith.truncf %51 : vector<8x4xf32> to vector<8x4xbf16>
    %53 = vector.extract_strided_slice %30 {offsets = [0, 36], sizes = [8, 4], strides = [1, 1]} : vector<16x96xf32> to vector<8x4xf32>
    %54 = arith.truncf %53 : vector<8x4xf32> to vector<8x4xbf16>
    %55 = vector.extract_strided_slice %30 {offsets = [0, 68], sizes = [8, 4], strides = [1, 1]} : vector<16x96xf32> to vector<8x4xf32>
    %56 = arith.truncf %55 : vector<8x4xf32> to vector<8x4xbf16>
    %cst_20 = arith.constant dense<0.000000e+00> : vector<8x8xf32>
    %57 = tpu.matmul %52, %54, %cst_20 {dimension_numbers = #tpu.dot_dimension_numbers<[1], [1], [0], [0], [0, 0, 1, 0], [], []>} : vector<8x4xbf16>, vector<8x4xbf16>, vector<8x8xf32> -> vector<8x8xf32>
    %cst_21 = arith.constant dense<0xFF800000> : vector<8xf32>
    %58 = vector.multi_reduction <maximumf>, %57, %cst_21 [1] : vector<8x8xf32> to vector<8xf32>
    %59 = vector.shape_cast %58 : vector<8xf32> to vector<8x1xf32>
    %60 = vector.broadcast %59 : vector<8x1xf32> to vector<8x8xf32>
    %61 = arith.subf %57, %60 : vector<8x8xf32>
    %62 = math.exp %61 : vector<8x8xf32>
    %cst_22 = arith.constant dense<0.000000e+00> : vector<8xf32>
    %63 = vector.multi_reduction <add>, %62, %cst_22 [1] : vector<8x8xf32> to vector<8xf32>
    %64 = vector.shape_cast %63 : vector<8xf32> to vector<8x1xf32>
    %65 = arith.truncf %62 : vector<8x8xf32> to vector<8x8xbf16>
    %cst_23 = arith.constant dense<0.000000e+00> : vector<8x4xf32>
    %66 = tpu.matmul %65, %56, %cst_23 {dimension_numbers = #tpu.dot_dimension_numbers<[1], [0], [0], [1], [0, 0, 1, 1], [], []>} : vector<8x8xbf16>, vector<8x4xbf16>, vector<8x4xf32> -> vector<8x4xf32>
    %67 = tpu.reciprocal %64 {approx = true} : vector<8x1xf32> -> vector<8x1xf32>
    %68 = vector.broadcast %67 : vector<8x1xf32> to vector<8x4xf32>
    %69 = arith.mulf %66, %68 : vector<8x4xf32>
    %c0_24 = arith.constant 0 : index
    %c4 = arith.constant 4 : index
    %70 = vector.load %arg15[%c0_24, %c4] : memref<16x32xf32, #tpu.memory_space<vmem>>, vector<8x4xf32>
    tpu.vector_store %arg15[%c0_24, %c4], %69 {strides = array<i32>} : memref<16x32xf32, #tpu.memory_space<vmem>>, vector<8x4xf32>,
    %71 = vector.extract_strided_slice %30 {offsets = [0, 8], sizes = [8, 4], strides = [1, 1]} : vector<16x96xf32> to vector<8x4xf32>
    %72 = arith.truncf %71 : vector<8x4xf32> to vector<8x4xbf16>
    %73 = vector.extract_strided_slice %30 {offsets = [0, 40], sizes = [8, 4], strides = [1, 1]} : vector<16x96xf32> to vector<8x4xf32>
    %74 = arith.truncf %73 : vector<8x4xf32> to vector<8x4xbf16>
    %75 = vector.extract_strided_slice %30 {offsets = [0, 72], sizes = [8, 4], strides = [1, 1]} : vector<16x96xf32> to vector<8x4xf32>
    %76 = arith.truncf %75 : vector<8x4xf32> to vector<8x4xbf16>
    %cst_25 = arith.constant dense<0.000000e+00> : vector<8x8xf32>
    %77 = tpu.matmul %72, %74, %cst_25 {dimension_numbers = #tpu.dot_dimension_numbers<[1], [1], [0], [0], [0, 0, 1, 0], [], []>} : vector<8x4xbf16>, vector<8x4xbf16>, vector<8x8xf32> -> vector<8x8xf32>
    %cst_26 = arith.constant dense<0xFF800000> : vector<8xf32>
    %78 = vector.multi_reduction <maximumf>, %77, %cst_26 [1] : vector<8x8xf32> to vector<8xf32>
    %79 = vector.shape_cast %78 : vector<8xf32> to vector<8x1xf32>
    %80 = vector.broadcast %79 : vector<8x1xf32> to vector<8x8xf32>
    %81 = arith.subf %77, %80 : vector<8x8xf32>
    %82 = math.exp %81 : vector<8x8xf32>
    %cst_27 = arith.constant dense<0.000000e+00> : vector<8xf32>
    %83 = vector.multi_reduction <add>, %82, %cst_27 [1] : vector<8x8xf32> to vector<8xf32>
    %84 = vector.shape_cast %83 : vector<8xf32> to vector<8x1xf32>
    %85 = arith.truncf %82 : vector<8x8xf32> to vector<8x8xbf16>
    %cst_28 = arith.constant dense<0.000000e+00> : vector<8x4xf32>
    %86 = tpu.matmul %85, %76, %cst_28 {dimension_numbers = #tpu.dot_dimension_numbers<[1], [0], [0], [1], [0, 0, 1, 1], [], []>} : vector<8x8xbf16>, vector<8x4xbf16>, vector<8x4xf32> -> vector<8x4xf32>
    %87 = tpu.reciprocal %84 {approx = true} : vector<8x1xf32> -> vector<8x1xf32>
    %88 = vector.broadcast %87 : vector<8x1xf32> to vector<8x4xf32>
    %89 = arith.mulf %86, %88 : vector<8x4xf32>
    %c0_29 = arith.constant 0 : index
    %c8 = arith.constant 8 : index
    %90 = vector.load %arg15[%c0_29, %c8] : memref<16x32xf32, #tpu.memory_space<vmem>>, vector<8x4xf32>
    tpu.vector_store %arg15[%c0_29, %c8], %89 {strides = array<i32>} : memref<16x32xf32, #tpu.memory_space<vmem>>, vector<8x4xf32>,
    %91 = vector.extract_strided_slice %30 {offsets = [0, 12], sizes = [8, 4], strides = [1, 1]} : vector<16x96xf32> to vector<8x4xf32>
    %92 = arith.truncf %91 : vector<8x4xf32> to vector<8x4xbf16>
    %93 = vector.extract_strided_slice %30 {offsets = [0, 44], sizes = [8, 4], strides = [1, 1]} : vector<16x96xf32> to vector<8x4xf32>
    %94 = arith.truncf %93 : vector<8x4xf32> to vector<8x4xbf16>
    %95 = vector.extract_strided_slice %30 {offsets = [0, 76], sizes = [8, 4], strides = [1, 1]} : vector<16x96xf32> to vector<8x4xf32>
    %96 = arith.truncf %95 : vector<8x4xf32> to vector<8x4xbf16>
    %cst_30 = arith.constant dense<0.000000e+00> : vector<8x8xf32>
    %97 = tpu.matmul %92, %94, %cst_30 {dimension_numbers = #tpu.dot_dimension_numbers<[1], [1], [0], [0], [0, 0, 1, 0], [], []>} : vector<8x4xbf16>, vector<8x4xbf16>, vector<8x8xf32> -> vector<8x8xf32>
    %cst_31 = arith.constant dense<0xFF800000> : vector<8xf32>
    %98 = vector.multi_reduction <maximumf>, %97, %cst_31 [1] : vector<8x8xf32> to vector<8xf32>
    %99 = vector.shape_cast %98 : vector<8xf32> to vector<8x1xf32>
    %100 = vector.broadcast %99 : vector<8x1xf32> to vector<8x8xf32>
    %101 = arith.subf %97, %100 : vector<8x8xf32>
    %102 = math.exp %101 : vector<8x8xf32>
    %cst_32 = arith.constant dense<0.000000e+00> : vector<8xf32>
    %103 = vector.multi_reduction <add>, %102, %cst_32 [1] : vector<8x8xf32> to vector<8xf32>
    %104 = vector.shape_cast %103 : vector<8xf32> to vector<8x1xf32>
    %105 = arith.truncf %102 : vector<8x8xf32> to vector<8x8xbf16>
    %cst_33 = arith.constant dense<0.000000e+00> : vector<8x4xf32>
    %106 = tpu.matmul %105, %96, %cst_33 {dimension_numbers = #tpu.dot_dimension_numbers<[1], [0], [0], [1], [0, 0, 1, 1], [], []>} : vector<8x8xbf16>, vector<8x4xbf16>, vector<8x4xf32> -> vector<8x4xf32>
    %107 = tpu.reciprocal %104 {approx = true} : vector<8x1xf32> -> vector<8x1xf32>
    %108 = vector.broadcast %107 : vector<8x1xf32> to vector<8x4xf32>
    %109 = arith.mulf %106, %108 : vector<8x4xf32>
    %c0_34 = arith.constant 0 : index
    %c12 = arith.constant 12 : index
    %110 = vector.load %arg15[%c0_34, %c12] : memref<16x32xf32, #tpu.memory_space<vmem>>, vector<8x4xf32>
    tpu.vector_store %arg15[%c0_34, %c12], %109 {strides = array<i32>} : memref<16x32xf32, #tpu.memory_space<vmem>>, vector<8x4xf32>,
    %111 = vector.extract_strided_slice %30 {offsets = [0, 16], sizes = [8, 4], strides = [1, 1]} : vector<16x96xf32> to vector<8x4xf32>
    %112 = arith.truncf %111 : vector<8x4xf32> to vector<8x4xbf16>
    %113 = vector.extract_strided_slice %30 {offsets = [0, 48], sizes = [8, 4], strides = [1, 1]} : vector<16x96xf32> to vector<8x4xf32>
    %114 = arith.truncf %113 : vector<8x4xf32> to vector<8x4xbf16>
    %115 = vector.extract_strided_slice %30 {offsets = [0, 80], sizes = [8, 4], strides = [1, 1]} : vector<16x96xf32> to vector<8x4xf32>
    %116 = arith.truncf %115 : vector<8x4xf32> to vector<8x4xbf16>
    %cst_35 = arith.constant dense<0.000000e+00> : vector<8x8xf32>
    %117 = tpu.matmul %112, %114, %cst_35 {dimension_numbers = #tpu.dot_dimension_numbers<[1], [1], [0], [0], [0, 0, 1, 0], [], []>} : vector<8x4xbf16>, vector<8x4xbf16>, vector<8x8xf32> -> vector<8x8xf32>
    %cst_36 = arith.constant dense<0xFF800000> : vector<8xf32>
    %118 = vector.multi_reduction <maximumf>, %117, %cst_36 [1] : vector<8x8xf32> to vector<8xf32>
    %119 = vector.shape_cast %118 : vector<8xf32> to vector<8x1xf32>
    %120 = vector.broadcast %119 : vector<8x1xf32> to vector<8x8xf32>
    %121 = arith.subf %117, %120 : vector<8x8xf32>
    %122 = math.exp %121 : vector<8x8xf32>
    %cst_37 = arith.constant dense<0.000000e+00> : vector<8xf32>
    %123 = vector.multi_reduction <add>, %122, %cst_37 [1] : vector<8x8xf32> to vector<8xf32>
    %124 = vector.shape_cast %123 : vector<8xf32> to vector<8x1xf32>
    %125 = arith.truncf %122 : vector<8x8xf32> to vector<8x8xbf16>
    %cst_38 = arith.constant dense<0.000000e+00> : vector<8x4xf32>
    %126 = tpu.matmul %125, %116, %cst_38 {dimension_numbers = #tpu.dot_dimension_numbers<[1], [0], [0], [1], [0, 0, 1, 1], [], []>} : vector<8x8xbf16>, vector<8x4xbf16>, vector<8x4xf32> -> vector<8x4xf32>
    %127 = tpu.reciprocal %124 {approx = true} : vector<8x1xf32> -> vector<8x1xf32>
    %128 = vector.broadcast %127 : vector<8x1xf32> to vector<8x4xf32>
    %129 = arith.mulf %126, %128 : vector<8x4xf32>
    %c0_39 = arith.constant 0 : index
    %c16 = arith.constant 16 : index
    %130 = vector.load %arg15[%c0_39, %c16] : memref<16x32xf32, #tpu.memory_space<vmem>>, vector<8x4xf32>
    tpu.vector_store %arg15[%c0_39, %c16], %129 {strides = array<i32>} : memref<16x32xf32, #tpu.memory_space<vmem>>, vector<8x4xf32>,
    %131 = vector.extract_strided_slice %30 {offsets = [0, 20], sizes = [8, 4], strides = [1, 1]} : vector<16x96xf32> to vector<8x4xf32>
    %132 = arith.truncf %131 : vector<8x4xf32> to vector<8x4xbf16>
    %133 = vector.extract_strided_slice %30 {offsets = [0, 52], sizes = [8, 4], strides = [1, 1]} : vector<16x96xf32> to vector<8x4xf32>
    %134 = arith.truncf %133 : vector<8x4xf32> to vector<8x4xbf16>
    %135 = vector.extract_strided_slice %30 {offsets = [0, 84], sizes = [8, 4], strides = [1, 1]} : vector<16x96xf32> to vector<8x4xf32>
    %136 = arith.truncf %135 : vector<8x4xf32> to vector<8x4xbf16>
    %cst_40 = arith.constant dense<0.000000e+00> : vector<8x8xf32>
    %137 = tpu.matmul %132, %134, %cst_40 {dimension_numbers = #tpu.dot_dimension_numbers<[1], [1], [0], [0], [0, 0, 1, 0], [], []>} : vector<8x4xbf16>, vector<8x4xbf16>, vector<8x8xf32> -> vector<8x8xf32>
    %cst_41 = arith.constant dense<0xFF800000> : vector<8xf32>
    %138 = vector.multi_reduction <maximumf>, %137, %cst_41 [1] : vector<8x8xf32> to vector<8xf32>
    %139 = vector.shape_cast %138 : vector<8xf32> to vector<8x1xf32>
    %140 = vector.broadcast %139 : vector<8x1xf32> to vector<8x8xf32>
    %141 = arith.subf %137, %140 : vector<8x8xf32>
    %142 = math.exp %141 : vector<8x8xf32>
    %cst_42 = arith.constant dense<0.000000e+00> : vector<8xf32>
    %143 = vector.multi_reduction <add>, %142, %cst_42 [1] : vector<8x8xf32> to vector<8xf32>
    %144 = vector.shape_cast %143 : vector<8xf32> to vector<8x1xf32>
    %145 = arith.truncf %142 : vector<8x8xf32> to vector<8x8xbf16>
    %cst_43 = arith.constant dense<0.000000e+00> : vector<8x4xf32>
    %146 = tpu.matmul %145, %136, %cst_43 {dimension_numbers = #tpu.dot_dimension_numbers<[1], [0], [0], [1], [0, 0, 1, 1], [], []>} : vector<8x8xbf16>, vector<8x4xbf16>, vector<8x4xf32> -> vector<8x4xf32>
    %147 = tpu.reciprocal %144 {approx = true} : vector<8x1xf32> -> vector<8x1xf32>
    %148 = vector.broadcast %147 : vector<8x1xf32> to vector<8x4xf32>
    %149 = arith.mulf %146, %148 : vector<8x4xf32>
    %c0_44 = arith.constant 0 : index
    %c20 = arith.constant 20 : index
    %150 = vector.load %arg15[%c0_44, %c20] : memref<16x32xf32, #tpu.memory_space<vmem>>, vector<8x4xf32>
    tpu.vector_store %arg15[%c0_44, %c20], %149 {strides = array<i32>} : memref<16x32xf32, #tpu.memory_space<vmem>>, vector<8x4xf32>,
    %151 = vector.extract_strided_slice %30 {offsets = [0, 24], sizes = [8, 4], strides = [1, 1]} : vector<16x96xf32> to vector<8x4xf32>
    %152 = arith.truncf %151 : vector<8x4xf32> to vector<8x4xbf16>
    %153 = vector.extract_strided_slice %30 {offsets = [0, 56], sizes = [8, 4], strides = [1, 1]} : vector<16x96xf32> to vector<8x4xf32>
    %154 = arith.truncf %153 : vector<8x4xf32> to vector<8x4xbf16>
    %155 = vector.extract_strided_slice %30 {offsets = [0, 88], sizes = [8, 4], strides = [1, 1]} : vector<16x96xf32> to vector<8x4xf32>
    %156 = arith.truncf %155 : vector<8x4xf32> to vector<8x4xbf16>
    %cst_45 = arith.constant dense<0.000000e+00> : vector<8x8xf32>
    %157 = tpu.matmul %152, %154, %cst_45 {dimension_numbers = #tpu.dot_dimension_numbers<[1], [1], [0], [0], [0, 0, 1, 0], [], []>} : vector<8x4xbf16>, vector<8x4xbf16>, vector<8x8xf32> -> vector<8x8xf32>
    %cst_46 = arith.constant dense<0xFF800000> : vector<8xf32>
    %158 = vector.multi_reduction <maximumf>, %157, %cst_46 [1] : vector<8x8xf32> to vector<8xf32>
    %159 = vector.shape_cast %158 : vector<8xf32> to vector<8x1xf32>
    %160 = vector.broadcast %159 : vector<8x1xf32> to vector<8x8xf32>
    %161 = arith.subf %157, %160 : vector<8x8xf32>
    %162 = math.exp %161 : vector<8x8xf32>
    %cst_47 = arith.constant dense<0.000000e+00> : vector<8xf32>
    %163 = vector.multi_reduction <add>, %162, %cst_47 [1] : vector<8x8xf32> to vector<8xf32>
    %164 = vector.shape_cast %163 : vector<8xf32> to vector<8x1xf32>
    %165 = arith.truncf %162 : vector<8x8xf32> to vector<8x8xbf16>
    %cst_48 = arith.constant dense<0.000000e+00> : vector<8x4xf32>
    %166 = tpu.matmul %165, %156, %cst_48 {dimension_numbers = #tpu.dot_dimension_numbers<[1], [0], [0], [1], [0, 0, 1, 1], [], []>} : vector<8x8xbf16>, vector<8x4xbf16>, vector<8x4xf32> -> vector<8x4xf32>
    %167 = tpu.reciprocal %164 {approx = true} : vector<8x1xf32> -> vector<8x1xf32>
    %168 = vector.broadcast %167 : vector<8x1xf32> to vector<8x4xf32>
    %169 = arith.mulf %166, %168 : vector<8x4xf32>
    %c0_49 = arith.constant 0 : index
    %c24 = arith.constant 24 : index
    %170 = vector.load %arg15[%c0_49, %c24] : memref<16x32xf32, #tpu.memory_space<vmem>>, vector<8x4xf32>
    tpu.vector_store %arg15[%c0_49, %c24], %169 {strides = array<i32>} : memref<16x32xf32, #tpu.memory_space<vmem>>, vector<8x4xf32>,
    %171 = vector.extract_strided_slice %30 {offsets = [0, 28], sizes = [8, 4], strides = [1, 1]} : vector<16x96xf32> to vector<8x4xf32>
    %172 = arith.truncf %171 : vector<8x4xf32> to vector<8x4xbf16>
    %173 = vector.extract_strided_slice %30 {offsets = [0, 60], sizes = [8, 4], strides = [1, 1]} : vector<16x96xf32> to vector<8x4xf32>
    %174 = arith.truncf %173 : vector<8x4xf32> to vector<8x4xbf16>
    %175 = vector.extract_strided_slice %30 {offsets = [0, 92], sizes = [8, 4], strides = [1, 1]} : vector<16x96xf32> to vector<8x4xf32>
    %176 = arith.truncf %175 : vector<8x4xf32> to vector<8x4xbf16>
    %cst_50 = arith.constant dense<0.000000e+00> : vector<8x8xf32>
    %177 = tpu.matmul %172, %174, %cst_50 {dimension_numbers = #tpu.dot_dimension_numbers<[1], [1], [0], [0], [0, 0, 1, 0], [], []>} : vector<8x4xbf16>, vector<8x4xbf16>, vector<8x8xf32> -> vector<8x8xf32>
    %cst_51 = arith.constant dense<0xFF800000> : vector<8xf32>
    %178 = vector.multi_reduction <maximumf>, %177, %cst_51 [1] : vector<8x8xf32> to vector<8xf32>
    %179 = vector.shape_cast %178 : vector<8xf32> to vector<8x1xf32>
    %180 = vector.broadcast %179 : vector<8x1xf32> to vector<8x8xf32>
    %181 = arith.subf %177, %180 : vector<8x8xf32>
    %182 = math.exp %181 : vector<8x8xf32>
    %cst_52 = arith.constant dense<0.000000e+00> : vector<8xf32>
    %183 = vector.multi_reduction <add>, %182, %cst_52 [1] : vector<8x8xf32> to vector<8xf32>
    %184 = vector.shape_cast %183 : vector<8xf32> to vector<8x1xf32>
    %185 = arith.truncf %182 : vector<8x8xf32> to vector<8x8xbf16>
    %cst_53 = arith.constant dense<0.000000e+00> : vector<8x4xf32>
    %186 = tpu.matmul %185, %176, %cst_53 {dimension_numbers = #tpu.dot_dimension_numbers<[1], [0], [0], [1], [0, 0, 1, 1], [], []>} : vector<8x8xbf16>, vector<8x4xbf16>, vector<8x4xf32> -> vector<8x4xf32>
    %187 = tpu.reciprocal %184 {approx = true} : vector<8x1xf32> -> vector<8x1xf32>
    %188 = vector.broadcast %187 : vector<8x1xf32> to vector<8x4xf32>
    %189 = arith.mulf %186, %188 : vector<8x4xf32>
    %c0_54 = arith.constant 0 : index
    %c28 = arith.constant 28 : index
    %190 = vector.load %arg15[%c0_54, %c28] : memref<16x32xf32, #tpu.memory_space<vmem>>, vector<8x4xf32>
    tpu.vector_store %arg15[%c0_54, %c28], %189 {strides = array<i32>} : memref<16x32xf32, #tpu.memory_space<vmem>>, vector<8x4xf32>,
    %191 = vector.extract_strided_slice %30 {offsets = [8, 0], sizes = [8, 4], strides = [1, 1]} : vector<16x96xf32> to vector<8x4xf32>
    %192 = arith.truncf %191 : vector<8x4xf32> to vector<8x4xbf16>
    %193 = vector.extract_strided_slice %30 {offsets = [8, 32], sizes = [8, 4], strides = [1, 1]} : vector<16x96xf32> to vector<8x4xf32>
    %194 = arith.truncf %193 : vector<8x4xf32> to vector<8x4xbf16>
    %195 = vector.extract_strided_slice %30 {offsets = [8, 64], sizes = [8, 4], strides = [1, 1]} : vector<16x96xf32> to vector<8x4xf32>
    %196 = arith.truncf %195 : vector<8x4xf32> to vector<8x4xbf16>
    %cst_55 = arith.constant dense<0.000000e+00> : vector<8x8xf32>
    %197 = tpu.matmul %192, %194, %cst_55 {dimension_numbers = #tpu.dot_dimension_numbers<[1], [1], [0], [0], [0, 0, 1, 0], [], []>} : vector<8x4xbf16>, vector<8x4xbf16>, vector<8x8xf32> -> vector<8x8xf32>
    %cst_56 = arith.constant dense<0xFF800000> : vector<8xf32>
    %198 = vector.multi_reduction <maximumf>, %197, %cst_56 [1] : vector<8x8xf32> to vector<8xf32>
    %199 = vector.shape_cast %198 : vector<8xf32> to vector<8x1xf32>
    %200 = vector.broadcast %199 : vector<8x1xf32> to vector<8x8xf32>
    %201 = arith.subf %197, %200 : vector<8x8xf32>
    %202 = math.exp %201 : vector<8x8xf32>
    %cst_57 = arith.constant dense<0.000000e+00> : vector<8xf32>
    %203 = vector.multi_reduction <add>, %202, %cst_57 [1] : vector<8x8xf32> to vector<8xf32>
    %204 = vector.shape_cast %203 : vector<8xf32> to vector<8x1xf32>
    %205 = arith.truncf %202 : vector<8x8xf32> to vector<8x8xbf16>
    %cst_58 = arith.constant dense<0.000000e+00> : vector<8x4xf32>
    %206 = tpu.matmul %205, %196, %cst_58 {dimension_numbers = #tpu.dot_dimension_numbers<[1], [0], [0], [1], [0, 0, 1, 1], [], []>} : vector<8x8xbf16>, vector<8x4xbf16>, vector<8x4xf32> -> vector<8x4xf32>
    %207 = tpu.reciprocal %204 {approx = true} : vector<8x1xf32> -> vector<8x1xf32>
    %208 = vector.broadcast %207 : vector<8x1xf32> to vector<8x4xf32>
    %209 = arith.mulf %206, %208 : vector<8x4xf32>
    %c8_59 = arith.constant 8 : index
    %c0_60 = arith.constant 0 : index
    %210 = vector.load %arg15[%c8_59, %c0_60] : memref<16x32xf32, #tpu.memory_space<vmem>>, vector<8x4xf32>
    tpu.vector_store %arg15[%c8_59, %c0_60], %209 {strides = array<i32>} : memref<16x32xf32, #tpu.memory_space<vmem>>, vector<8x4xf32>,
    %211 = vector.extract_strided_slice %30 {offsets = [8, 4], sizes = [8, 4], strides = [1, 1]} : vector<16x96xf32> to vector<8x4xf32>
    %212 = arith.truncf %211 : vector<8x4xf32> to vector<8x4xbf16>
    %213 = vector.extract_strided_slice %30 {offsets = [8, 36], sizes = [8, 4], strides = [1, 1]} : vector<16x96xf32> to vector<8x4xf32>
    %214 = arith.truncf %213 : vector<8x4xf32> to vector<8x4xbf16>
    %215 = vector.extract_strided_slice %30 {offsets = [8, 68], sizes = [8, 4], strides = [1, 1]} : vector<16x96xf32> to vector<8x4xf32>
    %216 = arith.truncf %215 : vector<8x4xf32> to vector<8x4xbf16>
    %cst_61 = arith.constant dense<0.000000e+00> : vector<8x8xf32>
    %217 = tpu.matmul %212, %214, %cst_61 {dimension_numbers = #tpu.dot_dimension_numbers<[1], [1], [0], [0], [0, 0, 1, 0], [], []>} : vector<8x4xbf16>, vector<8x4xbf16>, vector<8x8xf32> -> vector<8x8xf32>
    %cst_62 = arith.constant dense<0xFF800000> : vector<8xf32>
    %218 = vector.multi_reduction <maximumf>, %217, %cst_62 [1] : vector<8x8xf32> to vector<8xf32>
    %219 = vector.shape_cast %218 : vector<8xf32> to vector<8x1xf32>
    %220 = vector.broadcast %219 : vector<8x1xf32> to vector<8x8xf32>
    %221 = arith.subf %217, %220 : vector<8x8xf32>
    %222 = math.exp %221 : vector<8x8xf32>
    %cst_63 = arith.constant dense<0.000000e+00> : vector<8xf32>
    %223 = vector.multi_reduction <add>, %222, %cst_63 [1] : vector<8x8xf32> to vector<8xf32>
    %224 = vector.shape_cast %223 : vector<8xf32> to vector<8x1xf32>
    %225 = arith.truncf %222 : vector<8x8xf32> to vector<8x8xbf16>
    %cst_64 = arith.constant dense<0.000000e+00> : vector<8x4xf32>
    %226 = tpu.matmul %225, %216, %cst_64 {dimension_numbers = #tpu.dot_dimension_numbers<[1], [0], [0], [1], [0, 0, 1, 1], [], []>} : vector<8x8xbf16>, vector<8x4xbf16>, vector<8x4xf32> -> vector<8x4xf32>
    %227 = tpu.reciprocal %224 {approx = true} : vector<8x1xf32> -> vector<8x1xf32>
    %228 = vector.broadcast %227 : vector<8x1xf32> to vector<8x4xf32>
    %229 = arith.mulf %226, %228 : vector<8x4xf32>
    %c8_65 = arith.constant 8 : index
    %c4_66 = arith.constant 4 : index
    %230 = vector.load %arg15[%c8_65, %c4_66] : memref<16x32xf32, #tpu.memory_space<vmem>>, vector<8x4xf32>
    tpu.vector_store %arg15[%c8_65, %c4_66], %229 {strides = array<i32>} : memref<16x32xf32, #tpu.memory_space<vmem>>, vector<8x4xf32>,
    %231 = vector.extract_strided_slice %30 {offsets = [8, 8], sizes = [8, 4], strides = [1, 1]} : vector<16x96xf32> to vector<8x4xf32>
    %232 = arith.truncf %231 : vector<8x4xf32> to vector<8x4xbf16>
    %233 = vector.extract_strided_slice %30 {offsets = [8, 40], sizes = [8, 4], strides = [1, 1]} : vector<16x96xf32> to vector<8x4xf32>
    %234 = arith.truncf %233 : vector<8x4xf32> to vector<8x4xbf16>
    %235 = vector.extract_strided_slice %30 {offsets = [8, 72], sizes = [8, 4], strides = [1, 1]} : vector<16x96xf32> to vector<8x4xf32>
    %236 = arith.truncf %235 : vector<8x4xf32> to vector<8x4xbf16>
    %cst_67 = arith.constant dense<0.000000e+00> : vector<8x8xf32>
    %237 = tpu.matmul %232, %234, %cst_67 {dimension_numbers = #tpu.dot_dimension_numbers<[1], [1], [0], [0], [0, 0, 1, 0], [], []>} : vector<8x4xbf16>, vector<8x4xbf16>, vector<8x8xf32> -> vector<8x8xf32>
    %cst_68 = arith.constant dense<0xFF800000> : vector<8xf32>
    %238 = vector.multi_reduction <maximumf>, %237, %cst_68 [1] : vector<8x8xf32> to vector<8xf32>
    %239 = vector.shape_cast %238 : vector<8xf32> to vector<8x1xf32>
    %240 = vector.broadcast %239 : vector<8x1xf32> to vector<8x8xf32>
    %241 = arith.subf %237, %240 : vector<8x8xf32>
    %242 = math.exp %241 : vector<8x8xf32>
    %cst_69 = arith.constant dense<0.000000e+00> : vector<8xf32>
    %243 = vector.multi_reduction <add>, %242, %cst_69 [1] : vector<8x8xf32> to vector<8xf32>
    %244 = vector.shape_cast %243 : vector<8xf32> to vector<8x1xf32>
    %245 = arith.truncf %242 : vector<8x8xf32> to vector<8x8xbf16>
    %cst_70 = arith.constant dense<0.000000e+00> : vector<8x4xf32>
    %246 = tpu.matmul %245, %236, %cst_70 {dimension_numbers = #tpu.dot_dimension_numbers<[1], [0], [0], [1], [0, 0, 1, 1], [], []>} : vector<8x8xbf16>, vector<8x4xbf16>, vector<8x4xf32> -> vector<8x4xf32>
    %247 = tpu.reciprocal %244 {approx = true} : vector<8x1xf32> -> vector<8x1xf32>
    %248 = vector.broadcast %247 : vector<8x1xf32> to vector<8x4xf32>
    %249 = arith.mulf %246, %248 : vector<8x4xf32>
    %c8_71 = arith.constant 8 : index
    %c8_72 = arith.constant 8 : index
    %250 = vector.load %arg15[%c8_71, %c8_72] : memref<16x32xf32, #tpu.memory_space<vmem>>, vector<8x4xf32>
    tpu.vector_store %arg15[%c8_71, %c8_72], %249 {strides = array<i32>} : memref<16x32xf32, #tpu.memory_space<vmem>>, vector<8x4xf32>,
    %251 = vector.extract_strided_slice %30 {offsets = [8, 12], sizes = [8, 4], strides = [1, 1]} : vector<16x96xf32> to vector<8x4xf32>
    %252 = arith.truncf %251 : vector<8x4xf32> to vector<8x4xbf16>
    %253 = vector.extract_strided_slice %30 {offsets = [8, 44], sizes = [8, 4], strides = [1, 1]} : vector<16x96xf32> to vector<8x4xf32>
    %254 = arith.truncf %253 : vector<8x4xf32> to vector<8x4xbf16>
    %255 = vector.extract_strided_slice %30 {offsets = [8, 76], sizes = [8, 4], strides = [1, 1]} : vector<16x96xf32> to vector<8x4xf32>
    %256 = arith.truncf %255 : vector<8x4xf32> to vector<8x4xbf16>
    %cst_73 = arith.constant dense<0.000000e+00> : vector<8x8xf32>
    %257 = tpu.matmul %252, %254, %cst_73 {dimension_numbers = #tpu.dot_dimension_numbers<[1], [1], [0], [0], [0, 0, 1, 0], [], []>} : vector<8x4xbf16>, vector<8x4xbf16>, vector<8x8xf32> -> vector<8x8xf32>
    %cst_74 = arith.constant dense<0xFF800000> : vector<8xf32>
    %258 = vector.multi_reduction <maximumf>, %257, %cst_74 [1] : vector<8x8xf32> to vector<8xf32>
    %259 = vector.shape_cast %258 : vector<8xf32> to vector<8x1xf32>
    %260 = vector.broadcast %259 : vector<8x1xf32> to vector<8x8xf32>
    %261 = arith.subf %257, %260 : vector<8x8xf32>
    %262 = math.exp %261 : vector<8x8xf32>
    %cst_75 = arith.constant dense<0.000000e+00> : vector<8xf32>
    %263 = vector.multi_reduction <add>, %262, %cst_75 [1] : vector<8x8xf32> to vector<8xf32>
    %264 = vector.shape_cast %263 : vector<8xf32> to vector<8x1xf32>
    %265 = arith.truncf %262 : vector<8x8xf32> to vector<8x8xbf16>
    %cst_76 = arith.constant dense<0.000000e+00> : vector<8x4xf32>
    %266 = tpu.matmul %265, %256, %cst_76 {dimension_numbers = #tpu.dot_dimension_numbers<[1], [0], [0], [1], [0, 0, 1, 1], [], []>} : vector<8x8xbf16>, vector<8x4xbf16>, vector<8x4xf32> -> vector<8x4xf32>
    %267 = tpu.reciprocal %264 {approx = true} : vector<8x1xf32> -> vector<8x1xf32>
    %268 = vector.broadcast %267 : vector<8x1xf32> to vector<8x4xf32>
    %269 = arith.mulf %266, %268 : vector<8x4xf32>
    %c8_77 = arith.constant 8 : index
    %c12_78 = arith.constant 12 : index
    %270 = vector.load %arg15[%c8_77, %c12_78] : memref<16x32xf32, #tpu.memory_space<vmem>>, vector<8x4xf32>
    tpu.vector_store %arg15[%c8_77, %c12_78], %269 {strides = array<i32>} : memref<16x32xf32, #tpu.memory_space<vmem>>, vector<8x4xf32>,
    %271 = vector.extract_strided_slice %30 {offsets = [8, 16], sizes = [8, 4], strides = [1, 1]} : vector<16x96xf32> to vector<8x4xf32>
    %272 = arith.truncf %271 : vector<8x4xf32> to vector<8x4xbf16>
    %273 = vector.extract_strided_slice %30 {offsets = [8, 48], sizes = [8, 4], strides = [1, 1]} : vector<16x96xf32> to vector<8x4xf32>
    %274 = arith.truncf %273 : vector<8x4xf32> to vector<8x4xbf16>
    %275 = vector.extract_strided_slice %30 {offsets = [8, 80], sizes = [8, 4], strides = [1, 1]} : vector<16x96xf32> to vector<8x4xf32>
    %276 = arith.truncf %275 : vector<8x4xf32> to vector<8x4xbf16>
    %cst_79 = arith.constant dense<0.000000e+00> : vector<8x8xf32>
    %277 = tpu.matmul %272, %274, %cst_79 {dimension_numbers = #tpu.dot_dimension_numbers<[1], [1], [0], [0], [0, 0, 1, 0], [], []>} : vector<8x4xbf16>, vector<8x4xbf16>, vector<8x8xf32> -> vector<8x8xf32>
    %cst_80 = arith.constant dense<0xFF800000> : vector<8xf32>
    %278 = vector.multi_reduction <maximumf>, %277, %cst_80 [1] : vector<8x8xf32> to vector<8xf32>
    %279 = vector.shape_cast %278 : vector<8xf32> to vector<8x1xf32>
    %280 = vector.broadcast %279 : vector<8x1xf32> to vector<8x8xf32>
    %281 = arith.subf %277, %280 : vector<8x8xf32>
    %282 = math.exp %281 : vector<8x8xf32>
    %cst_81 = arith.constant dense<0.000000e+00> : vector<8xf32>
    %283 = vector.multi_reduction <add>, %282, %cst_81 [1] : vector<8x8xf32> to vector<8xf32>
    %284 = vector.shape_cast %283 : vector<8xf32> to vector<8x1xf32>
    %285 = arith.truncf %282 : vector<8x8xf32> to vector<8x8xbf16>
    %cst_82 = arith.constant dense<0.000000e+00> : vector<8x4xf32>
    %286 = tpu.matmul %285, %276, %cst_82 {dimension_numbers = #tpu.dot_dimension_numbers<[1], [0], [0], [1], [0, 0, 1, 1], [], []>} : vector<8x8xbf16>, vector<8x4xbf16>, vector<8x4xf32> -> vector<8x4xf32>
    %287 = tpu.reciprocal %284 {approx = true} : vector<8x1xf32> -> vector<8x1xf32>
    %288 = vector.broadcast %287 : vector<8x1xf32> to vector<8x4xf32>
    %289 = arith.mulf %286, %288 : vector<8x4xf32>
    %c8_83 = arith.constant 8 : index
    %c16_84 = arith.constant 16 : index
    %290 = vector.load %arg15[%c8_83, %c16_84] : memref<16x32xf32, #tpu.memory_space<vmem>>, vector<8x4xf32>
    tpu.vector_store %arg15[%c8_83, %c16_84], %289 {strides = array<i32>} : memref<16x32xf32, #tpu.memory_space<vmem>>, vector<8x4xf32>,
    %291 = vector.extract_strided_slice %30 {offsets = [8, 20], sizes = [8, 4], strides = [1, 1]} : vector<16x96xf32> to vector<8x4xf32>
    %292 = arith.truncf %291 : vector<8x4xf32> to vector<8x4xbf16>
    %293 = vector.extract_strided_slice %30 {offsets = [8, 52], sizes = [8, 4], strides = [1, 1]} : vector<16x96xf32> to vector<8x4xf32>
    %294 = arith.truncf %293 : vector<8x4xf32> to vector<8x4xbf16>
    %295 = vector.extract_strided_slice %30 {offsets = [8, 84], sizes = [8, 4], strides = [1, 1]} : vector<16x96xf32> to vector<8x4xf32>
    %296 = arith.truncf %295 : vector<8x4xf32> to vector<8x4xbf16>
    %cst_85 = arith.constant dense<0.000000e+00> : vector<8x8xf32>
    %297 = tpu.matmul %292, %294, %cst_85 {dimension_numbers = #tpu.dot_dimension_numbers<[1], [1], [0], [0], [0, 0, 1, 0], [], []>} : vector<8x4xbf16>, vector<8x4xbf16>, vector<8x8xf32> -> vector<8x8xf32>
    %cst_86 = arith.constant dense<0xFF800000> : vector<8xf32>
    %298 = vector.multi_reduction <maximumf>, %297, %cst_86 [1] : vector<8x8xf32> to vector<8xf32>
    %299 = vector.shape_cast %298 : vector<8xf32> to vector<8x1xf32>
    %300 = vector.broadcast %299 : vector<8x1xf32> to vector<8x8xf32>
    %301 = arith.subf %297, %300 : vector<8x8xf32>
    %302 = math.exp %301 : vector<8x8xf32>
    %cst_87 = arith.constant dense<0.000000e+00> : vector<8xf32>
    %303 = vector.multi_reduction <add>, %302, %cst_87 [1] : vector<8x8xf32> to vector<8xf32>
    %304 = vector.shape_cast %303 : vector<8xf32> to vector<8x1xf32>
    %305 = arith.truncf %302 : vector<8x8xf32> to vector<8x8xbf16>
    %cst_88 = arith.constant dense<0.000000e+00> : vector<8x4xf32>
    %306 = tpu.matmul %305, %296, %cst_88 {dimension_numbers = #tpu.dot_dimension_numbers<[1], [0], [0], [1], [0, 0, 1, 1], [], []>} : vector<8x8xbf16>, vector<8x4xbf16>, vector<8x4xf32> -> vector<8x4xf32>
    %307 = tpu.reciprocal %304 {approx = true} : vector<8x1xf32> -> vector<8x1xf32>
    %308 = vector.broadcast %307 : vector<8x1xf32> to vector<8x4xf32>
    %309 = arith.mulf %306, %308 : vector<8x4xf32>
    %c8_89 = arith.constant 8 : index
    %c20_90 = arith.constant 20 : index
    %310 = vector.load %arg15[%c8_89, %c20_90] : memref<16x32xf32, #tpu.memory_space<vmem>>, vector<8x4xf32>
    tpu.vector_store %arg15[%c8_89, %c20_90], %309 {strides = array<i32>} : memref<16x32xf32, #tpu.memory_space<vmem>>, vector<8x4xf32>,
    %311 = vector.extract_strided_slice %30 {offsets = [8, 24], sizes = [8, 4], strides = [1, 1]} : vector<16x96xf32> to vector<8x4xf32>
    %312 = arith.truncf %311 : vector<8x4xf32> to vector<8x4xbf16>
    %313 = vector.extract_strided_slice %30 {offsets = [8, 56], sizes = [8, 4], strides = [1, 1]} : vector<16x96xf32> to vector<8x4xf32>
    %314 = arith.truncf %313 : vector<8x4xf32> to vector<8x4xbf16>
    %315 = vector.extract_strided_slice %30 {offsets = [8, 88], sizes = [8, 4], strides = [1, 1]} : vector<16x96xf32> to vector<8x4xf32>
    %316 = arith.truncf %315 : vector<8x4xf32> to vector<8x4xbf16>
    %cst_91 = arith.constant dense<0.000000e+00> : vector<8x8xf32>
    %317 = tpu.matmul %312, %314, %cst_91 {dimension_numbers = #tpu.dot_dimension_numbers<[1], [1], [0], [0], [0, 0, 1, 0], [], []>} : vector<8x4xbf16>, vector<8x4xbf16>, vector<8x8xf32> -> vector<8x8xf32>
    %cst_92 = arith.constant dense<0xFF800000> : vector<8xf32>
    %318 = vector.multi_reduction <maximumf>, %317, %cst_92 [1] : vector<8x8xf32> to vector<8xf32>
    %319 = vector.shape_cast %318 : vector<8xf32> to vector<8x1xf32>
    %320 = vector.broadcast %319 : vector<8x1xf32> to vector<8x8xf32>
    %321 = arith.subf %317, %320 : vector<8x8xf32>
    %322 = math.exp %321 : vector<8x8xf32>
    %cst_93 = arith.constant dense<0.000000e+00> : vector<8xf32>
    %323 = vector.multi_reduction <add>, %322, %cst_93 [1] : vector<8x8xf32> to vector<8xf32>
    %324 = vector.shape_cast %323 : vector<8xf32> to vector<8x1xf32>
    %325 = arith.truncf %322 : vector<8x8xf32> to vector<8x8xbf16>
    %cst_94 = arith.constant dense<0.000000e+00> : vector<8x4xf32>
    %326 = tpu.matmul %325, %316, %cst_94 {dimension_numbers = #tpu.dot_dimension_numbers<[1], [0], [0], [1], [0, 0, 1, 1], [], []>} : vector<8x8xbf16>, vector<8x4xbf16>, vector<8x4xf32> -> vector<8x4xf32>
    %327 = tpu.reciprocal %324 {approx = true} : vector<8x1xf32> -> vector<8x1xf32>
    %328 = vector.broadcast %327 : vector<8x1xf32> to vector<8x4xf32>
    %329 = arith.mulf %326, %328 : vector<8x4xf32>
    %c8_95 = arith.constant 8 : index
    %c24_96 = arith.constant 24 : index
    %330 = vector.load %arg15[%c8_95, %c24_96] : memref<16x32xf32, #tpu.memory_space<vmem>>, vector<8x4xf32>
    tpu.vector_store %arg15[%c8_95, %c24_96], %329 {strides = array<i32>} : memref<16x32xf32, #tpu.memory_space<vmem>>, vector<8x4xf32>,
    %331 = vector.extract_strided_slice %30 {offsets = [8, 28], sizes = [8, 4], strides = [1, 1]} : vector<16x96xf32> to vector<8x4xf32>
    %332 = arith.truncf %331 : vector<8x4xf32> to vector<8x4xbf16>
    %333 = vector.extract_strided_slice %30 {offsets = [8, 60], sizes = [8, 4], strides = [1, 1]} : vector<16x96xf32> to vector<8x4xf32>
    %334 = arith.truncf %333 : vector<8x4xf32> to vector<8x4xbf16>
    %335 = vector.extract_strided_slice %30 {offsets = [8, 92], sizes = [8, 4], strides = [1, 1]} : vector<16x96xf32> to vector<8x4xf32>
    %336 = arith.truncf %335 : vector<8x4xf32> to vector<8x4xbf16>
    %cst_97 = arith.constant dense<0.000000e+00> : vector<8x8xf32>
    %337 = tpu.matmul %332, %334, %cst_97 {dimension_numbers = #tpu.dot_dimension_numbers<[1], [1], [0], [0], [0, 0, 1, 0], [], []>} : vector<8x4xbf16>, vector<8x4xbf16>, vector<8x8xf32> -> vector<8x8xf32>
    %cst_98 = arith.constant dense<0xFF800000> : vector<8xf32>
    %338 = vector.multi_reduction <maximumf>, %337, %cst_98 [1] : vector<8x8xf32> to vector<8xf32>
    %339 = vector.shape_cast %338 : vector<8xf32> to vector<8x1xf32>
    %340 = vector.broadcast %339 : vector<8x1xf32> to vector<8x8xf32>
    %341 = arith.subf %337, %340 : vector<8x8xf32>
    %342 = math.exp %341 : vector<8x8xf32>
    %cst_99 = arith.constant dense<0.000000e+00> : vector<8xf32>
    %343 = vector.multi_reduction <add>, %342, %cst_99 [1] : vector<8x8xf32> to vector<8xf32>
    %344 = vector.shape_cast %343 : vector<8xf32> to vector<8x1xf32>
    %345 = arith.truncf %342 : vector<8x8xf32> to vector<8x8xbf16>
    %cst_100 = arith.constant dense<0.000000e+00> : vector<8x4xf32>
    %346 = tpu.matmul %345, %336, %cst_100 {dimension_numbers = #tpu.dot_dimension_numbers<[1], [0], [0], [1], [0, 0, 1, 1], [], []>} : vector<8x8xbf16>, vector<8x4xbf16>, vector<8x4xf32> -> vector<8x4xf32>
    %347 = tpu.reciprocal %344 {approx = true} : vector<8x1xf32> -> vector<8x1xf32>
    %348 = vector.broadcast %347 : vector<8x1xf32> to vector<8x4xf32>
    %349 = arith.mulf %346, %348 : vector<8x4xf32>
    %c8_101 = arith.constant 8 : index
    %c28_102 = arith.constant 28 : index
    %350 = vector.load %arg15[%c8_101, %c28_102] : memref<16x32xf32, #tpu.memory_space<vmem>>, vector<8x4xf32>
    tpu.vector_store %arg15[%c8_101, %c28_102], %349 {strides = array<i32>} : memref<16x32xf32, #tpu.memory_space<vmem>>, vector<8x4xf32>,
    %c0_103 = arith.constant 0 : index
    %c0_104 = arith.constant 0 : index
    %351 = vector.load %arg15[%c0_103, %c0_104] : memref<16x32xf32, #tpu.memory_space<vmem>>, vector<16x32xf32>
    %352 = arith.truncf %351 : vector<16x32xf32> to vector<16x32xbf16>
    %c0_105 = arith.constant 0 : index
    %c0_106 = arith.constant 0 : index
    %353 = vector.load %arg6[%c0_105, %c0_106] : memref<32x32xbf16, #tpu.memory_space<vmem>>, vector<32x32xbf16>
    %cst_107 = arith.constant dense<0.000000e+00> : vector<16x32xf32>
    %354 = tpu.matmul %352, %353, %cst_107 {dimension_numbers = #tpu.dot_dimension_numbers<[1], [0], [0], [1], [0, 0, 1, 1], [], []>} : vector<16x32xbf16>, vector<32x32xbf16>, vector<16x32xf32> -> vector<16x32xf32>
    %c0_108 = arith.constant 0 : index
    %c0_109 = arith.constant 0 : index
    %355 = vector.load %arg7[%c0_108, %c0_109] : memref<1x32xf32, #tpu.memory_space<vmem>>, vector<1x32xf32>
    %356 = vector.broadcast %355 : vector<1x32xf32> to vector<16x32xf32>
    %357 = arith.addf %354, %356 : vector<16x32xf32>
    %358 = arith.addf %357, %0 : vector<16x32xf32>
    %c0_110 = arith.constant 0 : index
    %c0_111 = arith.constant 0 : index
    %359 = vector.load %arg8[%c0_110, %c0_111] : memref<1x32xf32, #tpu.memory_space<vmem>>, vector<1x32xf32>
    %c0_112 = arith.constant 0 : index
    %c0_113 = arith.constant 0 : index
    %360 = vector.load %arg9[%c0_112, %c0_113] : memref<1x32xf32, #tpu.memory_space<vmem>>, vector<1x32xf32>
    %cst_114 = arith.constant dense<0.000000e+00> : vector<16xf32>
    %361 = vector.multi_reduction <add>, %358, %cst_114 [1] : vector<16x32xf32> to vector<16xf32>
    %362 = vector.shape_cast %361 : vector<16xf32> to vector<16x1xf32>
    %cst_115 = arith.constant 3.200000e+01 : f32
    %363 = vector.broadcast %cst_115 : f32 to vector<16x1xf32>
    %364 = arith.divf %362, %363 : vector<16x1xf32>
    %365 = vector.broadcast %364 : vector<16x1xf32> to vector<16x32xf32>
    %366 = arith.subf %358, %365 : vector<16x32xf32>
    %367 = arith.mulf %366, %366 : vector<16x32xf32>
    %cst_116 = arith.constant dense<0.000000e+00> : vector<16xf32>
    %368 = vector.multi_reduction <add>, %367, %cst_116 [1] : vector<16x32xf32> to vector<16xf32>
    %369 = vector.shape_cast %368 : vector<16xf32> to vector<16x1xf32>
    %cst_117 = arith.constant 3.200000e+01 : f32
    %370 = vector.broadcast %cst_117 : f32 to vector<16x1xf32>
    %371 = arith.divf %369, %370 : vector<16x1xf32>
    %372 = vector.broadcast %364 : vector<16x1xf32> to vector<16x32xf32>
    %373 = arith.subf %358, %372 : vector<16x32xf32>
    %cst_118 = arith.constant 9.99999974E-6 : f32
    %374 = vector.broadcast %cst_118 : f32 to vector<16x1xf32>
    %375 = arith.addf %371, %374 : vector<16x1xf32>
    %376 = math.rsqrt %375 : vector<16x1xf32>
    %377 = vector.broadcast %376 : vector<16x1xf32> to vector<16x32xf32>
    %378 = arith.mulf %373, %377 : vector<16x32xf32>
    %379 = vector.broadcast %359 : vector<1x32xf32> to vector<16x32xf32>
    %380 = arith.mulf %378, %379 : vector<16x32xf32>
    %381 = vector.broadcast %360 : vector<1x32xf32> to vector<16x32xf32>
    %382 = arith.addf %380, %381 : vector<16x32xf32>
    %383 = arith.truncf %382 : vector<16x32xf32> to vector<16x32xbf16>
    %c0_119 = arith.constant 0 : index
    %c0_120 = arith.constant 0 : index
    %384 = vector.load %arg10[%c0_119, %c0_120] : memref<32x128xbf16, #tpu.memory_space<vmem>>, vector<32x128xbf16>
    %cst_121 = arith.constant dense<0.000000e+00> : vector<16x128xf32>
    %385 = tpu.matmul %383, %384, %cst_121 {dimension_numbers = #tpu.dot_dimension_numbers<[1], [0], [0], [1], [0, 0, 1, 1], [], []>} : vector<16x32xbf16>, vector<32x128xbf16>, vector<16x128xf32> -> vector<16x128xf32>
    %c0_122 = arith.constant 0 : index
    %c0_123 = arith.constant 0 : index
    %386 = vector.load %arg11[%c0_122, %c0_123] : memref<1x128xf32, #tpu.memory_space<vmem>>, vector<1x128xf32>
    %387 = vector.broadcast %386 : vector<1x128xf32> to vector<16x128xf32>
    %388 = arith.addf %385, %387 : vector<16x128xf32>
    %cst_124 = arith.constant 5.000000e-01 : f32
    %389 = vector.broadcast %cst_124 : f32 to vector<16x128xf32>
    %390 = arith.mulf %389, %388 : vector<16x128xf32>
    %cst_125 = arith.constant 0.707106769 : f32
    %391 = vector.broadcast %cst_125 : f32 to vector<16x128xf32>
    %392 = arith.mulf %388, %391 : vector<16x128xf32>
    %393 = math.erf %392 : vector<16x128xf32>
    %cst_126 = arith.constant 1.000000e+00 : f32
    %394 = vector.broadcast %cst_126 : f32 to vector<16x128xf32>
    %395 = arith.addf %394, %393 : vector<16x128xf32>
    %396 = arith.mulf %390, %395 : vector<16x128xf32>
    %397 = arith.truncf %396 : vector<16x128xf32> to vector<16x128xbf16>
    %c0_127 = arith.constant 0 : index
    %c0_128 = arith.constant 0 : index
    %398 = vector.load %arg12[%c0_127, %c0_128] : memref<128x32xbf16, #tpu.memory_space<vmem>>, vector<128x32xbf16>
    %cst_129 = arith.constant dense<0.000000e+00> : vector<16x32xf32>
    %399 = tpu.matmul %397, %398, %cst_129 {dimension_numbers = #tpu.dot_dimension_numbers<[1], [0], [0], [1], [0, 0, 1, 1], [], []>} : vector<16x128xbf16>, vector<128x32xbf16>, vector<16x32xf32> -> vector<16x32xf32>
    %c0_130 = arith.constant 0 : index
    %c0_131 = arith.constant 0 : index
    %400 = vector.load %arg13[%c0_130, %c0_131] : memref<1x32xf32, #tpu.memory_space<vmem>>, vector<1x32xf32>
    %401 = vector.broadcast %400 : vector<1x32xf32> to vector<16x32xf32>
    %402 = arith.addf %399, %401 : vector<16x32xf32>
    %403 = arith.addf %402, %358 : vector<16x32xf32>
    %c0_132 = arith.constant 0 : index
    %c0_133 = arith.constant 0 : index
    %404 = vector.load %arg14[%c0_132, %c0_133] : memref<16x32xf32, #tpu.memory_space<vmem>>, vector<16x32xf32>
    tpu.vector_store %arg14[%c0_132, %c0_133], %403 {strides = array<i32>} : memref<16x32xf32, #tpu.memory_space<vmem>>, vector<16x32xf32>,
    return
  }
  func.func @transform_0(%arg0: i32) -> (i32, i32) {
    %c0_i32 = arith.constant 0 : i32
    %c0_i32_0 = arith.constant 0 : i32
    return %arg0, %c0_i32 : i32, i32
  }
  func.func @transform_1(%arg0: i32) -> (i32, i32) {
    %c0_i32 = arith.constant 0 : i32
    %c0_i32_0 = arith.constant 0 : i32
    %c0_i32_1 = arith.constant 0 : i32
    return %c0_i32, %c0_i32_0 : i32, i32
  }
  func.func @transform_2(%arg0: i32) -> (i32, i32) {
    %c0_i32 = arith.constant 0 : i32
    %c0_i32_0 = arith.constant 0 : i32
    %c0_i32_1 = arith.constant 0 : i32
    return %c0_i32, %c0_i32_0 : i32, i32
  }
  func.func @transform_3(%arg0: i32) -> (i32, i32) {
    %c0_i32 = arith.constant 0 : i32
    %c0_i32_0 = arith.constant 0 : i32
    %c0_i32_1 = arith.constant 0 : i32
    return %c0_i32, %c0_i32_0 : i32, i32
  }
  func.func @transform_4(%arg0: i32) -> (i32, i32) {
    %c0_i32 = arith.constant 0 : i32
    %c0_i32_0 = arith.constant 0 : i32
    %c0_i32_1 = arith.constant 0 : i32
    return %c0_i32, %c0_i32_0 : i32, i32
  }
  func.func @transform_5(%arg0: i32) -> (i32, i32) {
    %c0_i32 = arith.constant 0 : i32
    %c0_i32_0 = arith.constant 0 : i32
    %c0_i32_1 = arith.constant 0 : i32
    return %c0_i32, %c0_i32_0 : i32, i32
  }
  func.func @transform_6(%arg0: i32) -> (i32, i32) {
    %c0_i32 = arith.constant 0 : i32
    %c0_i32_0 = arith.constant 0 : i32
    %c0_i32_1 = arith.constant 0 : i32
    return %c0_i32, %c0_i32_0 : i32, i32
  }
  func.func @transform_7(%arg0: i32) -> (i32, i32) {
    %c0_i32 = arith.constant 0 : i32
    %c0_i32_0 = arith.constant 0 : i32
    %c0_i32_1 = arith.constant 0 : i32
    return %c0_i32, %c0_i32_0 : i32, i32
  }
  func.func @transform_8(%arg0: i32) -> (i32, i32) {
    %c0_i32 = arith.constant 0 : i32
    %c0_i32_0 = arith.constant 0 : i32
    %c0_i32_1 = arith.constant 0 : i32
    return %c0_i32, %c0_i32_0 : i32, i32
  }
  func.func @transform_9(%arg0: i32) -> (i32, i32) {
    %c0_i32 = arith.constant 0 : i32
    %c0_i32_0 = arith.constant 0 : i32
    %c0_i32_1 = arith.constant 0 : i32
    return %c0_i32, %c0_i32_0 : i32, i32
  }
  func.func @transform_10(%arg0: i32) -> (i32, i32) {
    %c0_i32 = arith.constant 0 : i32
    %c0_i32_0 = arith.constant 0 : i32
    %c0_i32_1 = arith.constant 0 : i32
    return %c0_i32, %c0_i32_0 : i32, i32
  }
  func.func @transform_11(%arg0: i32) -> (i32, i32) {
    %c0_i32 = arith.constant 0 : i32
    %c0_i32_0 = arith.constant 0 : i32
    %c0_i32_1 = arith.constant 0 : i32
    return %c0_i32, %c0_i32_0 : i32, i32
  }
  func.func @transform_12(%arg0: i32) -> (i32, i32) {
    %c0_i32 = arith.constant 0 : i32
    %c0_i32_0 = arith.constant 0 : i32
    %c0_i32_1 = arith.constant 0 : i32
    return %c0_i32, %c0_i32_0 : i32, i32
  }
  func.func @transform_13(%arg0: i32) -> (i32, i32) {
    %c0_i32 = arith.constant 0 : i32
    %c0_i32_0 = arith.constant 0 : i32
    return %arg0, %c0_i32 : i32, i32
  }
}

</mosaic_0001>

<bundles_post_ra>
// kernel: tpu_custom_call.1
= control target key start
LH: loop header
LB: loop body
LE: loop exit
PB: predicated region body
PF: predicated region fallthrough
CT: control target
= control target key end

     0   :  { %vm50_vm0 = vcmask 261120   ;;  %s3496_s0 = inlined_call_operand.vmem [shape: f32[16,32], index: 0, kind: input, shape index: {}]   ;;  %s3497_s1 = inlined_call_operand.vmem [shape: f32[1,32], index: 1, kind: input, shape index: {}]   ;;  %s3498_s2 = inlined_call_operand.vmem [shape: f32[1,32], index: 2, kind: input, shape index: {}]   ;;  %s3499_s3 = inlined_call_operand.vmem [shape: bf16[32,96], index: 3, kind: input, shape index: {}]   ;;  %s3500_s4 = inlined_call_operand.vmem [shape: f32[1,96], index: 4, kind: input, shape index: {}]   ;;  %s3501_s5 = inlined_call_operand.vmem [shape: bf16[32,32], index: 5, kind: input, shape index: {}]   ;;  %s3502_s6 = inlined_call_operand.vmem [shape: f32[1,32], index: 6, kind: input, shape index: {}]   ;;  %s3503_s7 = inlined_call_operand.vmem [shape: f32[1,32], index: 7, kind: input, shape index: {}]   ;;  %s3504_s8 = inlined_call_operand.vmem [shape: f32[1,32], index: 8, kind: input, shape index: {}]   ;;  %s3505_s9 = inlined_call_operand.vmem [shape: bf16[32,128], index: 9, kind: input, shape index: {}]   ;;  %s3506_s10 = inlined_call_operand.vmem [shape: f32[1,128], index: 10, kind: input, shape index: {}]   ;;  %s3507_s11 = inlined_call_operand.vmem [shape: bf16[128,32], index: 11, kind: input, shape index: {}]   ;;  %s3508_s12 = inlined_call_operand.vmem [shape: f32[1,32], index: 12, kind: input, shape index: {}]   ;;  %s3509_s13 = inlined_call_operand.hbm [shape: f32[16,32], index: 13, kind: output, shape index: {}]  }
   0x1   :  { %v46_v0 = vld [vmem:[%s3496_s0] sm:$0xff]  ;;  %v47_v1 = vld [vmem:[%s3496_s0 + $0x8] sm:$0xff] }
   0x2   :  { %v51_v2 = vsel %vm50_vm0, %v46_v0, 0.0  ;;  %v54_v3 = vsel %vm50_vm0, %v47_v1, 0.0 }
   0x3   :  { %52 = vadd.xlane.f32.xlu0 %v51_v2 }
   0x7   :  { %55 = vadd.xlane.f32.xlu0 %v54_v3 }
   0x8   :  { %18 = vsyncpa [#allocation4], 0  ;;  %v2740_v14 = vld [vmem:[%s3499_s3] sm:$0xff]   ;;  %v2856_v15 = vmov 0.0   ;;  %v2741_v16 = vld [vmem:[%s3499_s3 + $0x8] sm:$0xff]   ;;  %vm2857_vm1 = vmmov 0  }
   0x9   :  { %2470 = vmatprep.subr.bf16.mxu0 %v2856_v15  ;;  %2490 = vmatprep.subr.bf16.mxu1 %v2856_v15  ;;  %v2331_v25 = vld [vmem:[%s3497_s1] ss:$0 sm:$0xff]  ;;  %s2858_s1 = smov 92   ;;  %s2860_s21 = smov 124   ;;  %vm166_vm2 = vcmask 31744   ;;  %vm229_vm3 = vcmask 1043456  }
   0xa   :  { %2471 = vmatpush3.bf16.msra.mxu0 %v2740_v14  ;;  %2474 = vmatprep.mubr.msk.bf16.mxu0 %vm2857_vm1, %v2856_v15  ;;  %v2332_v29 = vld [vmem:[%s3498_s2] ss:$0 sm:$0xff]  ;;  %s2859_s2 = smov 96   ;;  %s2862_s22 = smov 88   ;;  %vm213_vm4 = vcmask 64512   ;;  %vm390_vm5 = vcmask 64544  }
   0xb   :  { %2472 = vmatprep.subr.bf16.mxu0 %v2856_v15  ;;  %2492 = vmatprep.mubr.msk.bf16.mxu1 %vm2857_vm1, %v2856_v15  ;;  %v2333_v34 = vld [vmem:[%s3500_s4] ss:$0 sm:$0xff]  ;;  %s2861_s4 = smov 120   ;;  %s2863_s23 = smov 116   ;;  %vm506_vm6 = vcmask 97344   ;;  %vm622_vm7 = vcmask 130144  }
   0xc   :  { %s2864_s24 = smov 84   ;;  %s2865_s25 = smov 112   ;;  %vm738_vm8 = vcmask 162944   ;;  %vm854_vm9 = vcmask 195744   ;;  %vm970_vm10 = vcmask 228544   ;;  %vm1086_vm11 = vcmask 261344  }
   0xd   :  { %s2866_s26 = smov 80   ;;  %s2867_s27 = smov 108  }
   0xe   :  { %2473 = vmatpush3.bf16.msra.mxu0 %v2741_v16  ;;  %s2868_s28 = smov 76   ;;  %s2869_s29 = smov 104  }
   0xf   :  { %2478 = vmatprep.subr.bf16.mxu0 %v2856_v15  ;;  %s2870_s30 = smov 72   ;;  %s2871_s14 = smov 100  }
  0x10   :  { %s2872_s15 = smov 68   ;;  %s2873_s3 = smov 64  }
  0x11   :  { %s2874_s16 = smov 56   ;;  %s2875_s17 = smov 52  }
  0x12   :  { %s2876_s18 = smov 60   ;;  %s2877_s19 = smov 44  }
  0x13   :  { %s2878_s20 = smov 48  }
  0x90   :  { %v53_v4 = vpop.xlane.xlu0 %52 }
  0x91   :  { %v58_v5 = vmul.f32 0.03125, %v53_v4 }
  0x93   :  { %v60_v6 = vsub.f32 %v46_v0, %v58_v5 }
  0x94   :  { %v56_v7 = vpop.xlane.xlu0 %55 }
  0x95   :  { %v59_v8 = vmul.f32 0.03125, %v56_v7  ;;  %v62_v9 = vmul.f32 %v60_v6, %v60_v6 }
  0x97   :  { %v61_v10 = vsub.f32 %v47_v1, %v59_v8  ;;  %v64_v11 = vsel %vm50_vm0, %v62_v9, 0.0 }
  0x98   :  { %65 = vadd.xlane.f32.xlu1 %v64_v11 }
  0x99   :  { %v63_v12 = vmul.f32 %v61_v10, %v61_v10 }
  0x9b   :  { %v67_v13 = vsel %vm50_vm0, %v63_v12, 0.0 }
  0x9c   :  { %68 = vadd.xlane.f32.xlu1 %v67_v13 }
 0x125   :  { %v66_v17 = vpop.xlane.xlu1 %65 }
 0x126   :  { %v70_v18 = vmul.f32 0.03125, %v66_v17 }
 0x128   :  { %v72_v19 = vadd.f32 1e-05, %v70_v18 }
 0x129   :  { %v69_v20 = vpop.xlane.xlu1 %68 }
 0x12a   :  { %2754 = vrsqrt.f32 %v72_v19  ;;  %v71_v21 = vmul.f32 0.03125, %v69_v20 }
 0x12c   :  { %v73_v22 = vadd.f32 1e-05, %v71_v21 }
 0x12e   :  { %2756 = vrsqrt.f32 %v73_v22 }
 0x134   :  { %v2755_v23 = vpop.eup %2754 }
 0x135   :  { %v76_v24 = vmul.f32 %v2755_v23, %v60_v6 }
 0x137   :  { %v84_v28 = vmul.f32 %v2331_v25, %v76_v24 }
 0x138   :  { %v2757_v26 = vpop.eup %2756 }
 0x139   :  { %v77_v27 = vmul.f32 %v2757_v26, %v61_v10  ;;  %v92_v31 = vadd.f32 %v2332_v29, %v84_v28 }
 0x13b   :  { %v85_v30 = vmul.f32 %v2331_v25, %v77_v27 }
 0x13d   :  { %v93_v32 = vadd.f32 %v2332_v29, %v85_v30 }
 0x13f   :  { %v94_v33 = vpack.c.bf16 %v93_v32, %v92_v31 }
 0x141   :  { %2475 = vmatmul.mubr.msk.bf16.vlgmr.msra.gmra.mrb[0].mxu0 %vm50_vm0, %v94_v33 }
 0x142   :  { %2480 = vmatprep.mubr.msk.bf16.mxu0 %vm2857_vm1, %v2856_v15 }
 0x214   :  { %v155_v35 = vpop.f32.mrb[0].mxu0 }
 0x215   :  { %v156_v36 = vadd.f32 %v2333_v34, %v155_v35  ;;  %v2476_v37 = vpop.f32.mrb[1].mxu0 }
 0x216   :  { %v158_v38 = vpop.f32.mrb[2].mxu0 }
 0x217   :  { %v2996_v39 = vpack.c.bf16 %v156_v36, %v156_v36  ;;  %v2477_v40 = vpop.f32.mrb[3].mxu0  ;;  %v159_v41 = vadd.f32 %v2333_v34, %v158_v38 }
 0x219   :  { %278 = vrot.lane.b32.xlu1 %v2996_v39, %s2858_s1  ;;  %164 = vrot.lane.b32.xlu0 %v2996_v39, %s2859_s2  ;;  %v3017_v42 = vpack.c.bf16 %v159_v41, %v159_v41 }
 0x21d   :  { %276 = vrot.lane.b32.xlu1 %v2996_v39, %s2860_s21  ;;  %392 = vrot.lane.b32.xlu0 %v2996_v39, %s2861_s4 }
 0x221   :  { %394 = vrot.lane.b32.xlu1 %v2996_v39, %s2862_s22  ;;  %508 = vrot.lane.b32.xlu0 %v2996_v39, %s2863_s23 }
 0x225   :  { %510 = vrot.lane.b32.xlu1 %v2996_v39, %s2864_s24  ;;  %624 = vrot.lane.b32.xlu0 %v2996_v39, %s2865_s25 }
 0x229   :  { %626 = vrot.lane.b32.xlu1 %v2996_v39, %s2866_s26  ;;  %740 = vrot.lane.b32.xlu0 %v2996_v39, %s2867_s27 }
 0x22d   :  { %742 = vrot.lane.b32.xlu1 %v2996_v39, %s2868_s28  ;;  %856 = vrot.lane.b32.xlu0 %v2996_v39, %s2869_s29 }
 0x231   :  { %858 = vrot.lane.b32.xlu1 %v2996_v39, %s2870_s30  ;;  %972 = vrot.lane.b32.xlu0 %v2996_v39, %s2871_s14 }
 0x235   :  { %974 = vrot.lane.b32.xlu1 %v2996_v39, %s2872_s15  ;;  %1201 = vrot.lane.b32.xlu0 %v3017_v42, %s2858_s1  ;;  %s2879_s1 = smov 40  }
 0x239   :  { %1316 = vrot.lane.b32.xlu0 %v3017_v42, %s2862_s22  ;;  %1090 = vrot.lane.b32.xlu1 %v3017_v42, %s2859_s2  ;;  %s2880_s2 = smov 36   ;;  %s2883_s22 = smov 12  }
 0x23d   :  { %1431 = vrot.lane.b32.xlu0 %v3017_v42, %s2864_s24  ;;  %1199 = vrot.lane.b32.xlu1 %v3017_v42, %s2860_s21  ;;  %s2881_s21 = smov 4   ;;  %s2885_s24 = smov 20  }
 0x241   :  { %1546 = vrot.lane.b32.xlu0 %v3017_v42, %s2866_s26  ;;  %1314 = vrot.lane.b32.xlu1 %v3017_v42, %s2861_s4  ;;  %s2882_s4 = smov 8   ;;  %s2887_s26 = smov 28  }
 0x245   :  { %1661 = vrot.lane.b32.xlu0 %v3017_v42, %s2868_s28  ;;  %1429 = vrot.lane.b32.xlu1 %v3017_v42, %s2863_s23  ;;  %s2884_s23 = smov 16  }
 0x249   :  { %1776 = vrot.lane.b32.xlu0 %v3017_v42, %s2870_s30  ;;  %1544 = vrot.lane.b32.xlu1 %v3017_v42, %s2865_s25  ;;  %s2886_s25 = smov 24  }
 0x24d   :  { %1891 = vrot.lane.b32.xlu0 %v3017_v42, %s2872_s15  ;;  %1659 = vrot.lane.b32.xlu1 %v3017_v42, %s2867_s27 }
 0x251   :  { %224 = vrot.lane.b32.xlu0 %v2996_v39, %s2873_s3  ;;  %1774 = vrot.lane.b32.xlu1 %v3017_v42, %s2869_s29 }
 0x255   :  { %452 = vrot.lane.b32.xlu0 %v2996_v39, %s2874_s16  ;;  %1889 = vrot.lane.b32.xlu1 %v3017_v42, %s2871_s14 }
 0x259   :  { %568 = vrot.lane.b32.xlu0 %v2996_v39, %s2875_s17  ;;  %336 = vrot.lane.b32.xlu1 %v2996_v39, %s2876_s18 }
 0x25d   :  { %800 = vrot.lane.b32.xlu0 %v2996_v39, %s2877_s19  ;;  %684 = vrot.lane.b32.xlu1 %v2996_v39, %s2878_s20 }
 0x261   :  { %916 = vrot.lane.b32.xlu0 %v2996_v39, %s2879_s1 }
 0x28b   :  { %v279_v43 = vpop.permute.xlu1 %278  ;;  %v165_v44 = vpop.permute.xlu0 %164 }
 0x28c   :  { %v171_v45 = vsel %vm166_vm2, %v165_v44, 0  ;;  %v284_v46 = vsel %vm166_vm2, %v279_v43, 0 }
 0x28d   :  { %2479 = vmatpush3.bf16.xpose.msra.mxu0 %v171_v45  ;;  %2491 = vmatpush3.bf16.xpose.msra.mxu1 %v284_v46 }
 0x28e   :  { %2502 = vmatprep.subr.bf16.mxu1 %v2856_v15  ;;  %2484 = vmatprep.subr.bf16.mxu0 %v2856_v15 }
 0x28f   :  { %v277_v47 = vpop.permute.xlu1 %276  ;;  %v393_v48 = vpop.permute.xlu0 %392 }
 0x293   :  { %v395_v49 = vpop.permute.xlu1 %394  ;;  %v509_v50 = vpop.permute.xlu0 %508 }
 0x294   :  { %v400_v51 = vsel %vm166_vm2, %v395_v49, 0  ;;  %2481 = vmatmul.mubr.msk.bf16.vlgmr.msra.gmra.mrb[4].mxu0 %vm166_vm2, %v2996_v39  ;;  %2493 = vmatmul.mubr.msk.bf16.vlgmr.msra.gmra.mrb[0].mxu1 %vm166_vm2, %v277_v47 }
 0x295   :  { %2503 = vmatpush3.bf16.xpose.msra.mxu1 %v400_v51  ;;  %2504 = vmatprep.mubr.msk.bf16.mxu1 %vm2857_vm1, %v2856_v15 }
 0x296   :  { %2514 = vmatprep.subr.bf16.mxu1 %v2856_v15  ;;  %2486 = vmatprep.mubr.msk.bf16.mxu0 %vm2857_vm1, %v2856_v15 }
 0x297   :  { %v625_v52 = vpop.permute.xlu0 %624  ;;  %v511_v53 = vpop.permute.xlu1 %510 }
 0x298   :  { %v516_v55 = vsel %vm166_vm2, %v511_v53, 0 }
 0x29b   :  { %v741_v54 = vpop.permute.xlu0 %740  ;;  %v627_v57 = vpop.permute.xlu1 %626 }
 0x29c   :  { %2505 = vmatmul.mubr.msk.bf16.vlgmr.msra.gmra.mrb[4].mxu1 %vm166_vm2, %v393_v48  ;;  %v632_v59 = vsel %vm166_vm2, %v627_v57, 0 }
 0x29d   :  { %2515 = vmatpush3.bf16.xpose.msra.mxu1 %v516_v55  ;;  %2516 = vmatprep.mubr.msk.bf16.mxu1 %vm2857_vm1, %v2856_v15 }
 0x29e   :  { %2526 = vmatprep.subr.bf16.mxu1 %v2856_v15 }
 0x29f   :  { %v857_v56 = vpop.permute.xlu0 %856  ;;  %v743_v61 = vpop.permute.xlu1 %742 }
 0x2a0   :  { %v748_v63 = vsel %vm166_vm2, %v743_v61, 0 }
 0x2a3   :  { %v973_v58 = vpop.permute.xlu0 %972  ;;  %v859_v1 = vpop.permute.xlu1 %858 }
 0x2a4   :  { %2517 = vmatmul.mubr.msk.bf16.vlgmr.msra.gmra.mrb[8].mxu1 %vm166_vm2, %v509_v50  ;;  %v864_v3 = vsel %vm166_vm2, %v859_v1, 0 }
 0x2a5   :  { %2527 = vmatpush3.bf16.xpose.msra.mxu1 %v632_v59  ;;  %2528 = vmatprep.mubr.msk.bf16.mxu1 %vm2857_vm1, %v2856_v15 }
 0x2a6   :  { %2538 = vmatprep.subr.bf16.mxu1 %v2856_v15 }
 0x2a7   :  { %v1202_v60 = vpop.permute.xlu0 %1201  ;;  %v975_v5 = vpop.permute.xlu1 %974 }
 0x2a8   :  { %v980_v7 = vsel %vm166_vm2, %v975_v5, 0  ;;  %v1207_v13 = vsel %vm166_vm2, %v1202_v60, 0 }
 0x2ab   :  { %v1317_v62 = vpop.permute.xlu0 %1316  ;;  %v1091_v9 = vpop.permute.xlu1 %1090 }
 0x2ac   :  { %2529 = vmatmul.mubr.msk.bf16.vlgmr.msra.gmra.mrb[12].mxu1 %vm166_vm2, %v625_v52  ;;  %v1096_v11 = vsel %vm166_vm2, %v1091_v9, 0  ;;  %v1322_v16 = vsel %vm166_vm2, %v1317_v62, 0 }
 0x2ad   :  { %2539 = vmatpush3.bf16.xpose.msra.mxu1 %v748_v63  ;;  %2540 = vmatprep.mubr.msk.bf16.mxu1 %vm2857_vm1, %v2856_v15 }
 0x2ae   :  { %2550 = vmatprep.subr.bf16.mxu1 %v2856_v15 }
 0x2af   :  { %v1432_v0 = vpop.permute.xlu0 %1431  ;;  %v1200_v14 = vpop.permute.xlu1 %1199 }
 0x2b0   :  { %v1437_v18 = vsel %vm166_vm2, %v1432_v0, 0 }
 0x2b3   :  { %v1547_v2 = vpop.permute.xlu0 %1546  ;;  %v1315_v17 = vpop.permute.xlu1 %1314 }
 0x2b4   :  { %2541 = vmatmul.mubr.msk.bf16.vlgmr.msra.gmra.mrb[16].mxu1 %vm166_vm2, %v741_v54  ;;  %v1552_v20 = vsel %vm166_vm2, %v1547_v2, 0 }
 0x2b5   :  { %2551 = vmatpush3.bf16.xpose.msra.mxu1 %v864_v3  ;;  %2552 = vmatprep.mubr.msk.bf16.mxu1 %vm2857_vm1, %v2856_v15 }
 0x2b6   :  { %2562 = vmatprep.subr.bf16.mxu1 %v2856_v15 }
 0x2b7   :  { %v1662_v4 = vpop.permute.xlu0 %1661  ;;  %v1430_v19 = vpop.permute.xlu1 %1429 }
 0x2b8   :  { %v1667_v22 = vsel %vm166_vm2, %v1662_v4, 0 }
 0x2bb   :  { %v1777_v6 = vpop.permute.xlu0 %1776  ;;  %v1545_v21 = vpop.permute.xlu1 %1544 }
 0x2bc   :  { %2553 = vmatmul.mubr.msk.bf16.vlgmr.msra.gmra.mrb[20].mxu1 %vm166_vm2, %v857_v56  ;;  %v1782_v24 = vsel %vm166_vm2, %v1777_v6, 0 }
 0x2bd   :  { %2563 = vmatpush3.bf16.xpose.msra.mxu1 %v980_v7  ;;  %2564 = vmatprep.mubr.msk.bf16.mxu1 %vm2857_vm1, %v2856_v15 }
 0x2be   :  { %2574 = vmatprep.subr.bf16.mxu1 %v2856_v15 }
 0x2bf   :  { %v1892_v8 = vpop.permute.xlu0 %1891  ;;  %v1660_v23 = vpop.permute.xlu1 %1659 }
 0x2c0   :  { %v1897_v26 = vsel %vm166_vm2, %v1892_v8, 0 }
 0x2c3   :  { %v225_v10 = vpop.permute.xlu0 %224  ;;  %v1775_v25 = vpop.permute.xlu1 %1774 }
 0x2c4   :  { %v231_v12 = vsel %vm229_vm3, %v225_v10, 0  ;;  %2565 = vmatmul.mubr.msk.bf16.vlgmr.msra.gmra.mrb[24].mxu1 %vm166_vm2, %v973_v58 }
 0x2c5   :  { %2485 = vmatpush3.bf16.msra.mxu0 %v231_v12  ;;  %2575 = vmatpush3.bf16.xpose.msra.mxu1 %v1096_v11 }
 0x2c6   :  { %2576 = vmatprep.mubr.msk.bf16.mxu1 %vm2857_vm1, %v2856_v15  ;;  %2586 = vmatprep.subr.bf16.mxu1 %v2856_v15 }
 0x2c7   :  { %2496 = vmatprep.subr.bf16.mxu0 %v2856_v15  ;;  %v1890_v27 = vpop.permute.xlu1 %1889 }
 0x2cc   :  { %2577 = vmatmul.mubr.msk.bf16.vlgmr.msra.gmra.mrb[28].mxu1 %vm166_vm2, %v3017_v42 }
 0x2cd   :  { %2587 = vmatpush3.bf16.xpose.msra.mxu1 %v1207_v13  ;;  %2588 = vmatprep.mubr.msk.bf16.mxu1 %vm2857_vm1, %v2856_v15 }
 0x2ce   :  { %2598 = vmatprep.subr.bf16.mxu1 %v2856_v15 }
 0x2d4   :  { %2589 = vmatmul.mubr.msk.bf16.vlgmr.msra.gmra.mrb[32].mxu1 %vm166_vm2, %v1200_v14 }
 0x2d5   :  { %2599 = vmatpush3.bf16.xpose.msra.mxu1 %v1322_v16  ;;  %2600 = vmatprep.mubr.msk.bf16.mxu1 %vm2857_vm1, %v2856_v15 }
 0x2d6   :  { %2610 = vmatprep.subr.bf16.mxu1 %v2856_v15 }
 0x2dc   :  { %2601 = vmatmul.mubr.msk.bf16.vlgmr.msra.gmra.mrb[36].mxu1 %vm166_vm2, %v1315_v17 }
 0x2dd   :  { %2611 = vmatpush3.bf16.xpose.msra.mxu1 %v1437_v18  ;;  %2612 = vmatprep.mubr.msk.bf16.mxu1 %vm2857_vm1, %v2856_v15 }
 0x2de   :  { %2622 = vmatprep.subr.bf16.mxu1 %v2856_v15 }
 0x2e4   :  { %2613 = vmatmul.mubr.msk.bf16.vlgmr.msra.gmra.mrb[40].mxu1 %vm166_vm2, %v1430_v19 }
 0x2e5   :  { %2623 = vmatpush3.bf16.xpose.msra.mxu1 %v1552_v20  ;;  %2624 = vmatprep.mubr.msk.bf16.mxu1 %vm2857_vm1, %v2856_v15 }
 0x2e6   :  { %2634 = vmatprep.subr.bf16.mxu1 %v2856_v15 }
 0x2ec   :  { %2625 = vmatmul.mubr.msk.bf16.vlgmr.msra.gmra.mrb[44].mxu1 %vm166_vm2, %v1545_v21 }
 0x2ed   :  { %2635 = vmatpush3.bf16.xpose.msra.mxu1 %v1667_v22  ;;  %2636 = vmatprep.mubr.msk.bf16.mxu1 %vm2857_vm1, %v2856_v15 }
 0x2ee   :  { %2646 = vmatprep.subr.bf16.mxu1 %v2856_v15 }
 0x2f4   :  { %2637 = vmatmul.mubr.msk.bf16.vlgmr.msra.gmra.mrb[48].mxu1 %vm166_vm2, %v1660_v23 }
 0x2f5   :  { %2647 = vmatpush3.bf16.xpose.msra.mxu1 %v1782_v24  ;;  %2648 = vmatprep.mubr.msk.bf16.mxu1 %vm2857_vm1, %v2856_v15 }
 0x2f6   :  { %2658 = vmatprep.subr.bf16.mxu1 %v2856_v15 }
 0x2fc   :  { %2649 = vmatmul.mubr.msk.bf16.vlgmr.msra.gmra.mrb[52].mxu1 %vm166_vm2, %v1775_v25 }
 0x2fd   :  { %2659 = vmatpush3.bf16.xpose.msra.mxu1 %v1897_v26  ;;  %2660 = vmatprep.mubr.msk.bf16.mxu1 %vm2857_vm1, %v2856_v15 }
 0x2fe   :  { %2670 = vmatprep.subr.bf16.mxu1 %v2856_v15 }
 0x304   :  { %2661 = vmatmul.mubr.msk.bf16.vlgmr.msra.gmra.mrb[56].mxu1 %vm166_vm2, %v1890_v27 }
 0x305   :  { %2674 = vmatprep.mubr.msk.bf16.mxu1 %vm2857_vm1, %v2856_v15 }
 0x367   :  { %v3138_v28 = vpop.f32.mrb[4].mxu0  ;;  %v3140_v29 = vpop.f32.mrb[0].mxu1 }
 0x368   :  { %v2482_v30 = vpop.f32.mrb[5].mxu0  ;;  %v2494_v31 = vpop.f32.mrb[1].mxu1  ;;  %v326_v32 = vsel %vm213_vm4, %v3140_v29, -inf  ;;  %v214_v33 = vsel %vm213_vm4, %v3138_v28, -inf }
 0x369   :  { %v323_v34 = vpop.f32.mrb[2].mxu1  ;;  %327 = vmax.xlane.f32.xlu1 %v326_v32  ;;  %215 = vmax.xlane.f32.xlu0 %v214_v33  ;;  %v210_v35 = vpop.f32.mrb[6].mxu0 }
 0x36a   :  { %v2483_v36 = vpop.f32.mrb[7].mxu0  ;;  %v2495_v37 = vpop.f32.mrb[3].mxu1 }
 0x36f   :  { %v3146_v38 = vpop.f32.mrb[4].mxu1 }
 0x370   :  { %v2506_v40 = vpop.f32.mrb[5].mxu1  ;;  %v442_v0 = vsel %vm213_vm4, %v3146_v38, -inf }
 0x371   :  { %v439_v41 = vpop.f32.mrb[6].mxu1 }
 0x372   :  { %v2507_v43 = vpop.f32.mrb[7].mxu1 }
 0x377   :  { %v3148_v44 = vpop.f32.mrb[8].mxu1 }
 0x378   :  { %v2518_v45 = vpop.f32.mrb[9].mxu1  ;;  %v558_v5 = vsel %vm213_vm4, %v3148_v44, -inf }
 0x379   :  { %v555_v46 = vpop.f32.mrb[10].mxu1 }
 0x37a   :  { %v2519_v47 = vpop.f32.mrb[11].mxu1  ;;  %1032 = vrot.lane.b32.xlu1 %v2996_v39, %s2880_s2 }
 0x37b   :  { %v453_v47 = vpop.permute.xlu0 %452 }
 0x37f   :  { %v3152_v48 = vpop.f32.mrb[12].mxu1  ;;  %1148 = vrot.lane.b32.xlu0 %v3017_v42, %s2873_s3 }
 0x380   :  { %v2530_v49 = vpop.f32.mrb[13].mxu1  ;;  %v674_v63 = vsel %vm213_vm4, %v3152_v48, -inf }
 0x381   :  { %v671_v50 = vpop.f32.mrb[14].mxu1 }
 0x382   :  { %v2531_v51 = vpop.f32.mrb[15].mxu1  ;;  %v569_v50 = vpop.permute.xlu0 %568 }
 0x387   :  { %v3156_v52 = vpop.f32.mrb[16].mxu1 }
 0x388   :  { %v2542_v53 = vpop.f32.mrb[17].mxu1  ;;  %v790_v4 = vsel %vm213_vm4, %v3156_v52, -inf }
 0x389   :  { %v787_v54 = vpop.f32.mrb[18].mxu1  ;;  %v3204_v53 = vpop.permute.xlu0 %800 }
 0x38a   :  { %v2543_v55 = vpop.f32.mrb[19].mxu1  ;;  %v337_v54 = vpop.permute.xlu1 %336 }
 0x38f   :  { %v3158_v56 = vpop.f32.mrb[20].mxu1 }
 0x390   :  { %v2554_v57 = vpop.f32.mrb[21].mxu1  ;;  %v906_v37 = vsel %vm213_vm4, %v3158_v56, -inf }
 0x391   :  { %v903_v58 = vpop.f32.mrb[22].mxu1  ;;  %v3210_v57 = vpop.permute.xlu0 %916 }
 0x392   :  { %v2555_v59 = vpop.f32.mrb[23].mxu1  ;;  %v685_v58 = vpop.permute.xlu1 %684 }
 0x397   :  { %v3160_v60 = vpop.f32.mrb[24].mxu1 }
 0x398   :  { %v2566_v39 = vpop.f32.mrb[25].mxu1  ;;  %v1022_v7 = vsel %vm213_vm4, %v3160_v60, -inf }
 0x399   :  { %v1019_v61 = vpop.f32.mrb[26].mxu1 }
 0x39a   :  { %v2567_v62 = vpop.f32.mrb[27].mxu1 }
 0x39e   :  { %675 = vmax.xlane.f32.xlu1 %v674_v63  ;;  %443 = vmax.xlane.f32.xlu0 %v442_v0 }
 0x39f   :  { %v3166_v1 = vpop.f32.mrb[28].mxu1 }
 0x3a0   :  { %v2578_v2 = vpop.f32.mrb[29].mxu1  ;;  %v1138_v11 = vsel %vm213_vm4, %v3166_v1, -inf }
 0x3a1   :  { %v1135_v3 = vpop.f32.mrb[30].mxu1 }
 0x3a2   :  { %791 = vmax.xlane.f32.xlu1 %v790_v4  ;;  %v2579_v6 = vpop.f32.mrb[31].mxu1  ;;  %559 = vmax.xlane.f32.xlu0 %v558_v5  ;;  %v342_v3 = vsel %vm229_vm3, %v337_v54, 0 }
 0x3a3   :  { %v458_v6 = vsel %vm229_vm3, %v453_v47, 0 }
 0x3a6   :  { %1023 = vmax.xlane.f32.xlu1 %v1022_v7 }
 0x3a7   :  { %v3174_v8 = vpop.f32.mrb[32].mxu1 }
 0x3a8   :  { %v2590_v9 = vpop.f32.mrb[33].mxu1  ;;  %v1249_v46 = vsel %vm213_vm4, %v3174_v8, -inf }
 0x3a9   :  { %v1246_v10 = vpop.f32.mrb[34].mxu1 }
 0x3aa   :  { %1139 = vmax.xlane.f32.xlu1 %v1138_v11  ;;  %v2591_v12 = vpop.f32.mrb[35].mxu1 }
 0x3af   :  { %v3178_v13 = vpop.f32.mrb[36].mxu1 }
 0x3b0   :  { %v2602_v14 = vpop.f32.mrb[37].mxu1  ;;  %v1364_v16 = vsel %vm213_vm4, %v3178_v13, -inf }
 0x3b1   :  { %1365 = vmax.xlane.f32.xlu1 %v1364_v16  ;;  %v1361_v17 = vpop.f32.mrb[38].mxu1 }
 0x3b2   :  { %v2603_v18 = vpop.f32.mrb[39].mxu1 }
 0x3b7   :  { %v3182_v19 = vpop.f32.mrb[40].mxu1 }
 0x3b8   :  { %v2614_v20 = vpop.f32.mrb[41].mxu1  ;;  %1259 = vrot.lane.b32.xlu0 %v3017_v42, %s2876_s18  ;;  %v1479_v49 = vsel %vm213_vm4, %v3182_v19, -inf }
 0x3b9   :  { %v1476_v21 = vpop.f32.mrb[42].mxu1 }
 0x3ba   :  { %v2615_v22 = vpop.f32.mrb[43].mxu1 }
 0x3bf   :  { %v3186_v23 = vpop.f32.mrb[44].mxu1 }
 0x3c0   :  { %v2626_v24 = vpop.f32.mrb[45].mxu1  ;;  %v1594_v4 = vsel %vm213_vm4, %v3186_v23, -inf }
 0x3c1   :  { %v1591_v25 = vpop.f32.mrb[46].mxu1 }
 0x3c2   :  { %1374 = vrot.lane.b32.xlu1 %v3017_v42, %s2874_s16  ;;  %v2627_v26 = vpop.f32.mrb[47].mxu1 }
 0x3c7   :  { %v3190_v27 = vpop.f32.mrb[48].mxu1 }
 0x3c8   :  { %v2638_v30 = vpop.f32.mrb[49].mxu1  ;;  %v1709_v51 = vsel %vm213_vm4, %v3190_v27, -inf }
 0x3c9   :  { %v1706_v31 = vpop.f32.mrb[50].mxu1 }
 0x3ca   :  { %v2639_v32 = vpop.f32.mrb[51].mxu1 }
 0x3cf   :  { %v3192_v33 = vpop.f32.mrb[52].mxu1 }
 0x3d0   :  { %v2650_v34 = vpop.f32.mrb[53].mxu1  ;;  %v1824_v55 = vsel %vm213_vm4, %v3192_v33, -inf }
 0x3d1   :  { %v1821_v35 = vpop.f32.mrb[54].mxu1 }
 0x3d2   :  { %v2651_v36 = vpop.f32.mrb[55].mxu1  ;;  %v690_v35 = vsel %vm229_vm3, %v685_v58, 0 }
 0x3d7   :  { %v3196_v40 = vpop.f32.mrb[56].mxu1  ;;  %907 = vmax.xlane.f32.xlu0 %v906_v37 }
 0x3d8   :  { %v2662_v41 = vpop.f32.mrb[57].mxu1  ;;  %v1939_v7 = vsel %vm213_vm4, %v3196_v40, -inf }
 0x3d9   :  { %v1936_v43 = vpop.f32.mrb[58].mxu1 }
 0x3da   :  { %v2663_v45 = vpop.f32.mrb[59].mxu1 }
 0x3db   :  { %1250 = vmax.xlane.f32.xlu0 %v1249_v46  ;;  %v806_v46 = vsel %vm229_vm3, %v3204_v53, 0 }
 0x3e6   :  { %1480 = vmax.xlane.f32.xlu1 %v1479_v49 }
 0x3ea   :  { %1710 = vmax.xlane.f32.xlu1 %v1709_v51  ;;  %v922_v51 = vsel %vm229_vm3, %v3210_v57, 0 }
 0x3ee   :  { %1825 = vmax.xlane.f32.xlu1 %v1824_v55 }
 0x3f1   :  { %1489 = vrot.lane.b32.xlu0 %v3017_v42, %s2875_s17 }
 0x3f6   :  { %v216_v59 = vpop.xlane.xlu0 %215  ;;  %v328_v39 = vpop.xlane.xlu1 %327 }
 0x3f7   :  { %v217_v61 = vsub.f32 %v3138_v28, %v216_v59  ;;  %v329_v63 = vsub.f32 %v3140_v29, %v328_v39 }
 0x3f9   :  { %v218_v62 = vmul.f32 1.442695, %v217_v61  ;;  %v330_v0 = vmul.f32 1.442695, %v329_v63 }
 0x3fa   :  { %v3238_v9 = vpop.permute.xlu0 %1148  ;;  %v3240_v10 = vpop.permute.xlu1 %1032 }
 0x3fb   :  { %2758 = vpow2.f32 %v218_v62 }
 0x3fc   :  { %2760 = vpow2.f32 %v330_v0 }
 0x3ff   :  { %1719 = vrot.lane.b32.xlu1 %v3017_v42, %s2877_s19 }
 0x403   :  { %1834 = vrot.lane.b32.xlu1 %v3017_v42, %s2879_s1 }
 0x405   :  { %v3218_v2 = vpop.eup %2758 }
 0x406   :  { %v223_v28 = vpack.c.bf16 %v3218_v2, %v3218_v2  ;;  %v2761_v29 = vpop.eup %2760 }
 0x407   :  { %1949 = vrot.lane.b32.xlu1 %v3017_v42, %s2880_s2  ;;  %v335_v5 = vpack.c.bf16 %v2761_v29, %v2761_v29 }
 0x408   :  { %2487 = vmatmul.mubr.msk.bf16.vlgmr.msra.gmra.mrb[8].mxu0 %vm213_vm4, %v223_v28 }
 0x409   :  { %2497 = vmatpush3.bf16.msra.mxu0 %v342_v3  ;;  %2498 = vmatprep.mubr.msk.bf16.mxu0 %vm2857_vm1, %v2856_v15 }
 0x40a   :  { %2508 = vmatprep.subr.bf16.mxu0 %v2856_v15 }
 0x410   :  { %1595 = vmax.xlane.f32.xlu0 %v1594_v4  ;;  %2499 = vmatmul.mubr.msk.bf16.vlgmr.msra.gmra.mrb[12].mxu0 %vm213_vm4, %v335_v5 }
 0x411   :  { %2509 = vmatpush3.bf16.msra.mxu0 %v458_v6  ;;  %2510 = vmatprep.mubr.msk.bf16.mxu0 %vm2857_vm1, %v2856_v15 }
 0x412   :  { %2520 = vmatprep.subr.bf16.mxu0 %v2856_v15 }
 0x414   :  { %1940 = vmax.xlane.f32.xlu0 %v1939_v7 }
 0x42a   :  { %1604 = vrot.lane.b32.xlu0 %v3017_v42, %s2878_s20  ;;  %v574_v42 = vsel %vm229_vm3, %v569_v50, 0 }
 0x42b   :  { %v444_v11 = vpop.xlane.xlu0 %443  ;;  %v676_v14 = vpop.xlane.xlu1 %675 }
 0x42c   :  { %v445_v12 = vsub.f32 %v3146_v38, %v444_v11  ;;  %v677_v22 = vsub.f32 %v3152_v48, %v676_v14 }
 0x42e   :  { %v446_v16 = vmul.f32 1.442695, %v445_v12  ;;  %v678_v26 = vmul.f32 1.442695, %v677_v22  ;;  %v1038_v12 = vsel %vm229_vm3, %v3240_v10, 0  ;;  %v220_v10 = vsel %vm213_vm4, %v3218_v2, 0.0 }
 0x42f   :  { %v560_v17 = vpop.xlane.xlu0 %559  ;;  %v792_v21 = vpop.xlane.xlu1 %791 }
 0x430   :  { %v561_v18 = vsub.f32 %v3148_v44, %v560_v17  ;;  %2762 = vpow2.f32 %v446_v16  ;;  %v793_v38 = vsub.f32 %v3156_v52, %v792_v21  ;;  %v332_v52 = vsel %vm213_vm4, %v2761_v29, 0.0 }
 0x431   :  { %v1154_v17 = vsel %vm229_vm3, %v3238_v9, 0 }
 0x432   :  { %v562_v20 = vmul.f32 1.442695, %v561_v18  ;;  %v794_v31 = vmul.f32 1.442695, %v793_v38 }
 0x433   :  { %v1024_v24 = vpop.xlane.xlu1 %1023  ;;  %v1260_v58 = vpop.permute.xlu0 %1259 }
 0x434   :  { %2764 = vpow2.f32 %v562_v20  ;;  %v1025_v57 = vsub.f32 %v3160_v60, %v1024_v24  ;;  %v1265_v22 = vsel %vm229_vm3, %v1260_v58, 0 }
 0x435   :  { %2766 = vpow2.f32 %v678_v26 }
 0x436   :  { %2768 = vpow2.f32 %v794_v31  ;;  %v1026_v61 = vmul.f32 1.442695, %v1025_v57 }
 0x437   :  { %v1140_v44 = vpop.xlane.xlu1 %1139 }
 0x438   :  { %v1141_v3 = vsub.f32 %v3166_v1, %v1140_v44 }
 0x43a   :  { %v2763_v25 = vpop.eup %2762  ;;  %v1142_v5 = vmul.f32 1.442695, %v1141_v3 }
 0x43b   :  { %v451_v30 = vpack.c.bf16 %v2763_v25, %v2763_v25  ;;  %v448_v43 = vsel %vm213_vm4, %v2763_v25, 0.0 }
 0x43d   :  { %2511 = vmatmul.mubr.msk.bf16.vlgmr.msra.gmra.mrb[16].mxu0 %vm213_vm4, %v451_v30 }
 0x43e   :  { %2521 = vmatpush3.bf16.msra.mxu0 %v574_v42  ;;  %2522 = vmatprep.mubr.msk.bf16.mxu0 %vm2857_vm1, %v2856_v15  ;;  %v2765_v48 = vpop.eup %2764  ;;  %v1366_v32 = vpop.xlane.xlu1 %1365 }
 0x43f   :  { %2532 = vmatprep.subr.bf16.mxu0 %v2856_v15  ;;  %v567_v34 = vpack.c.bf16 %v2765_v48, %v2765_v48  ;;  %v1367_v36 = vsub.f32 %v3178_v13, %v1366_v32  ;;  %v2767_v37 = vpop.eup %2766  ;;  %v564_v13 = vsel %vm213_vm4, %v2765_v48, 0.0 }
 0x440   :  { %v683_v45 = vpack.c.bf16 %v2767_v37, %v2767_v37  ;;  %v2769_v47 = vpop.eup %2768  ;;  %v680_v50 = vsel %vm213_vm4, %v2767_v37, 0.0 }
 0x441   :  { %v1368_v41 = vmul.f32 1.442695, %v1367_v36  ;;  %v799_v49 = vpack.c.bf16 %v2769_v47, %v2769_v47  ;;  %v796_v53 = vsel %vm213_vm4, %v2769_v47, 0.0 }
 0x442   :  { %v1375_v29 = vpop.permute.xlu1 %1374 }
 0x443   :  { %2770 = vpow2.f32 %v1368_v41  ;;  %v1380_v24 = vsel %vm229_vm3, %v1375_v29, 0 }
 0x445   :  { %2523 = vmatmul.mubr.msk.bf16.vlgmr.msra.gmra.mrb[20].mxu0 %vm213_vm4, %v567_v34 }
 0x446   :  { %2533 = vmatpush3.bf16.msra.mxu0 %v690_v35  ;;  %2534 = vmatprep.mubr.msk.bf16.mxu0 %vm2857_vm1, %v2856_v15 }
 0x447   :  { %2544 = vmatprep.subr.bf16.mxu0 %v2856_v15 }
 0x449   :  { %333 = vadd.xlane.f32.xlu0 %v332_v52 }
 0x44d   :  { %449 = vadd.xlane.f32.xlu0 %v448_v43  ;;  %2535 = vmatmul.mubr.msk.bf16.vlgmr.msra.gmra.mrb[24].mxu0 %vm213_vm4, %v683_v45  ;;  %v3276_v54 = vpop.eup %2770 }
 0x44e   :  { %2545 = vmatpush3.bf16.msra.mxu0 %v806_v46  ;;  %2546 = vmatprep.mubr.msk.bf16.mxu0 %vm2857_vm1, %v2856_v15  ;;  %v1370_v55 = vsel %vm213_vm4, %v3276_v54, 0.0  ;;  %v1373_v26 = vpack.c.bf16 %v3276_v54, %v3276_v54 }
 0x44f   :  { %2556 = vmatprep.subr.bf16.mxu0 %v2856_v15 }
 0x451   :  { %565 = vadd.xlane.f32.xlu0 %v564_v13 }
 0x455   :  { %681 = vadd.xlane.f32.xlu0 %v680_v50  ;;  %2547 = vmatmul.mubr.msk.bf16.vlgmr.msra.gmra.mrb[28].mxu0 %vm213_vm4, %v799_v49 }
 0x456   :  { %2557 = vmatpush3.bf16.msra.mxu0 %v922_v51  ;;  %2558 = vmatprep.mubr.msk.bf16.mxu0 %vm2857_vm1, %v2856_v15 }
 0x457   :  { %2568 = vmatprep.subr.bf16.mxu0 %v2856_v15 }
 0x459   :  { %797 = vadd.xlane.f32.xlu0 %v796_v53 }
 0x45d   :  { %1371 = vadd.xlane.f32.xlu0 %v1370_v55 }
 0x464   :  { %v908_v59 = vpop.xlane.xlu0 %907 }
 0x465   :  { %v909_v39 = vsub.f32 %v3158_v56, %v908_v59 }
 0x467   :  { %v910_v62 = vmul.f32 1.442695, %v909_v39 }
 0x468   :  { %v1251_v63 = vpop.xlane.xlu0 %1250 }
 0x469   :  { %2772 = vpow2.f32 %v910_v62  ;;  %v1252_v0 = vsub.f32 %v3174_v8, %v1251_v63 }
 0x46a   :  { %2774 = vpow2.f32 %v1026_v61 }
 0x46b   :  { %v1253_v28 = vmul.f32 1.442695, %v1252_v0 }
 0x46c   :  { %v1490_v25 = vpop.permute.xlu0 %1489 }
 0x46d   :  { %2776 = vpow2.f32 %v1253_v28  ;;  %v1495_v30 = vsel %vm229_vm3, %v1490_v25, 0 }
 0x46e   :  { %2778 = vpow2.f32 %v1142_v5 }
 0x473   :  { %v2773_v4 = vpop.eup %2772  ;;  %v1481_v6 = vpop.xlane.xlu1 %1480 }
 0x474   :  { %v1482_v60 = vsub.f32 %v3182_v19, %v1481_v6  ;;  %v912_v7 = vsel %vm213_vm4, %v2773_v4, 0.0  ;;  %v915_v56 = vpack.c.bf16 %v2773_v4, %v2773_v4  ;;  %v2775_v11 = vpop.eup %2774 }
 0x475   :  { %913 = vadd.xlane.f32.xlu0 %v912_v7  ;;  %v1028_v1 = vsel %vm213_vm4, %v2775_v11, 0.0  ;;  %v1031_v16 = vpack.c.bf16 %v2775_v11, %v2775_v11 }
 0x476   :  { %v1483_v8 = vmul.f32 1.442695, %v1482_v60  ;;  %2559 = vmatmul.mubr.msk.bf16.vlgmr.msra.gmra.mrb[32].mxu0 %vm213_vm4, %v915_v56 }
 0x477   :  { %v2777_v14 = vpop.eup %2776  ;;  %2569 = vmatpush3.bf16.msra.mxu0 %v1038_v12  ;;  %2570 = vmatprep.mubr.msk.bf16.mxu0 %vm2857_vm1, %v2856_v15  ;;  %v1711_v42 = vpop.xlane.xlu1 %1710 }
 0x478   :  { %2780 = vpow2.f32 %v1483_v8  ;;  %v1255_v19 = vsel %vm213_vm4, %v2777_v14, 0.0  ;;  %2580 = vmatprep.subr.bf16.mxu0 %v2856_v15  ;;  %v3302_v18 = vpop.eup %2778  ;;  %v1258_v9 = vpack.c.bf16 %v2777_v14, %v2777_v14  ;;  %v1712_v38 = vsub.f32 %v3190_v27, %v1711_v42 }
 0x479   :  { %1029 = vadd.xlane.f32.xlu0 %v1028_v1  ;;  %1256 = vadd.xlane.f32.xlu1 %v1255_v19  ;;  %v1147_v2 = vpack.c.bf16 %v3302_v18, %v3302_v18  ;;  %v1144_v39 = vsel %vm213_vm4, %v3302_v18, 0.0 }
 0x47a   :  { %v1713_v34 = vmul.f32 1.442695, %v1712_v38 }
 0x47b   :  { %v1826_v48 = vpop.xlane.xlu1 %1825 }
 0x47c   :  { %v1827_v35 = vsub.f32 %v3192_v33, %v1826_v48 }
 0x47d   :  { %221 = vadd.xlane.f32.xlu0 %v220_v10 }
 0x47e   :  { %2571 = vmatmul.mubr.msk.bf16.vlgmr.msra.gmra.mrb[36].mxu0 %vm213_vm4, %v1031_v16  ;;  %v1828_v37 = vmul.f32 1.442695, %v1827_v35 }
 0x47f   :  { %2581 = vmatpush3.bf16.msra.mxu0 %v1154_v17  ;;  %2582 = vmatprep.mubr.msk.bf16.mxu0 %vm2857_vm1, %v2856_v15  ;;  %v1720_v46 = vpop.permute.xlu1 %1719 }
 0x480   :  { %2592 = vmatprep.subr.bf16.mxu0 %v2856_v15  ;;  %v1725_v49 = vsel %vm229_vm3, %v1720_v46, 0 }
 0x482   :  { %v2781_v20 = vpop.eup %2780 }
 0x483   :  { %v1485_v21 = vsel %vm213_vm4, %v2781_v20, 0.0  ;;  %v1488_v44 = vpack.c.bf16 %v2781_v20, %v2781_v20  ;;  %v1835_v51 = vpop.permute.xlu1 %1834 }
 0x484   :  { %1486 = vadd.xlane.f32.xlu1 %v1485_v21  ;;  %v1840_v58 = vsel %vm229_vm3, %v1835_v51, 0 }
 0x486   :  { %2583 = vmatmul.mubr.msk.bf16.vlgmr.msra.gmra.mrb[40].mxu0 %vm213_vm4, %v1147_v2 }
 0x487   :  { %2593 = vmatpush3.bf16.msra.mxu0 %v1265_v22  ;;  %2594 = vmatprep.mubr.msk.bf16.mxu0 %vm2857_vm1, %v2856_v15  ;;  %v1950_v59 = vpop.permute.xlu1 %1949 }
 0x488   :  { %2604 = vmatprep.subr.bf16.mxu0 %v2856_v15  ;;  %v1955_v62 = vsel %vm229_vm3, %v1950_v59, 0 }
 0x48e   :  { %2595 = vmatmul.mubr.msk.bf16.vlgmr.msra.gmra.mrb[44].mxu0 %vm213_vm4, %v1258_v9 }
 0x48f   :  { %2605 = vmatpush3.bf16.msra.mxu0 %v1380_v24  ;;  %2606 = vmatprep.mubr.msk.bf16.mxu0 %vm2857_vm1, %v2856_v15 }
 0x490   :  { %2616 = vmatprep.subr.bf16.mxu0 %v2856_v15 }
 0x496   :  { %2607 = vmatmul.mubr.msk.bf16.vlgmr.msra.gmra.mrb[48].mxu0 %vm213_vm4, %v1373_v26 }
 0x497   :  { %2617 = vmatpush3.bf16.msra.mxu0 %v1495_v30  ;;  %2618 = vmatprep.mubr.msk.bf16.mxu0 %vm2857_vm1, %v2856_v15 }
 0x498   :  { %2628 = vmatprep.subr.bf16.mxu0 %v2856_v15 }
 0x49d   :  { %v1596_v31 = vpop.xlane.xlu0 %1595 }
 0x49e   :  { %v1597_v32 = vsub.f32 %v3186_v23, %v1596_v31  ;;  %2619 = vmatmul.mubr.msk.bf16.vlgmr.msra.gmra.mrb[52].mxu0 %vm213_vm4, %v1488_v44 }
 0x49f   :  { %2630 = vmatprep.mubr.msk.bf16.mxu0 %vm2857_vm1, %v2856_v15 }
 0x4a0   :  { %v1598_v36 = vmul.f32 1.442695, %v1597_v32 }
 0x4a1   :  { %v1941_v52 = vpop.xlane.xlu0 %1940 }
 0x4a2   :  { %2782 = vpow2.f32 %v1598_v36  ;;  %v1942_v27 = vsub.f32 %v3196_v40, %v1941_v52 }
 0x4a3   :  { %2784 = vpow2.f32 %v1713_v34 }
 0x4a4   :  { %2786 = vpow2.f32 %v1828_v37  ;;  %v1943_v23 = vmul.f32 1.442695, %v1942_v27 }
 0x4a5   :  { %v1605_v41 = vpop.permute.xlu0 %1604 }
 0x4a6   :  { %v1610_v43 = vsel %vm229_vm3, %v1605_v41, 0  ;;  %2788 = vpow2.f32 %v1943_v23 }
 0x4a7   :  { %2629 = vmatpush3.bf16.msra.mxu0 %v1610_v43 }
 0x4a8   :  { %2640 = vmatprep.subr.bf16.mxu0 %v2856_v15 }
 0x4ac   :  { %v2783_v45 = vpop.eup %2782 }
 0x4ad   :  { %v1600_v33 = vsel %vm213_vm4, %v2783_v45, 0.0  ;;  %v1603_v13 = vpack.c.bf16 %v2783_v45, %v2783_v45  ;;  %v2785_v47 = vpop.eup %2784 }
 0x4ae   :  { %1601 = vadd.xlane.f32.xlu1 %v1600_v33  ;;  %v1715_v40 = vsel %vm213_vm4, %v2785_v47, 0.0  ;;  %v2787_v50 = vpop.eup %2786  ;;  %v1718_v54 = vpack.c.bf16 %v2785_v47, %v2785_v47 }
 0x4af   :  { %2631 = vmatmul.mubr.msk.bf16.vlgmr.msra.gmra.mrb[56].mxu0 %vm213_vm4, %v1603_v13  ;;  %v1830_v53 = vsel %vm213_vm4, %v2787_v50, 0.0  ;;  %v1833_v61 = vpack.c.bf16 %v2787_v50, %v2787_v50 }
 0x4b0   :  { %2641 = vmatpush3.bf16.msra.mxu0 %v1725_v49  ;;  %2642 = vmatprep.mubr.msk.bf16.mxu0 %vm2857_vm1, %v2856_v15  ;;  %v2789_v55 = vpop.eup %2788 }
 0x4b1   :  { %2652 = vmatprep.subr.bf16.mxu0 %v2856_v15  ;;  %v1945_v57 = vsel %vm213_vm4, %v2789_v55, 0.0  ;;  %v1948_v63 = vpack.c.bf16 %v2789_v55, %v2789_v55 }
 0x4b2   :  { %1716 = vadd.xlane.f32.xlu1 %v1715_v40 }
 0x4b6   :  { %1831 = vadd.xlane.f32.xlu1 %v1830_v53 }
 0x4b7   :  { %2643 = vmatmul.mubr.msk.bf16.vlgmr.msra.gmra.mrb[60].mxu0 %vm213_vm4, %v1718_v54 }
 0x4b8   :  { %2653 = vmatpush3.bf16.msra.mxu0 %v1840_v58  ;;  %2654 = vmatprep.mubr.msk.bf16.mxu0 %vm2857_vm1, %v2856_v15 }
 0x4b9   :  { %2664 = vmatprep.subr.bf16.mxu0 %v2856_v15 }
 0x4ba   :  { %1946 = vadd.xlane.f32.xlu1 %v1945_v57 }
 0x4be   :  { %1145 = vadd.xlane.f32.xlu1 %v1144_v39 }
 0x4bf   :  { %2655 = vmatmul.mubr.msk.bf16.vlgmr.msra.gmra.mrb[64].mxu0 %vm213_vm4, %v1833_v61 }
 0x4c0   :  { %2665 = vmatpush3.bf16.msra.mxu0 %v1955_v62  ;;  %2666 = vmatprep.mubr.msk.bf16.mxu0 %vm2857_vm1, %v2856_v15 }
 0x4c1   :  { %2678 = vmatprep.subr.bf16.mxu0 %v2856_v15 }
 0x4c7   :  { %2667 = vmatmul.mubr.msk.bf16.vlgmr.msra.gmra.mrb[68].mxu0 %vm213_vm4, %v1948_v63 }
 0x4c8   :  { %2682 = vmatprep.mubr.msk.bf16.mxu0 %vm2857_vm1, %v2856_v15 }
 0x4d6   :  { %v334_v0 = vpop.xlane.xlu0 %333 }
 0x4d7   :  { %2790 = vrcp.f32 %v334_v0 }
 0x4da   :  { %v450_v56 = vpop.xlane.xlu0 %449 }
 0x4db   :  { %v267_v28 = vpop.f32.mrb[8].mxu0  ;;  %2792 = vrcp.f32 %v450_v56 }
 0x4dc   :  { %v2488_v3 = vpop.f32.mrb[9].mxu0 }
 0x4dd   :  { %v270_v29 = vpop.f32.mrb[10].mxu0 }
 0x4de   :  { %v2489_v4 = vpop.f32.mrb[11].mxu0  ;;  %v566_v8 = vpop.xlane.xlu0 %565 }
 0x4e1   :  { %v2791_v5 = vpop.eup %2790 }
 0x4e2   :  { %v682_v14 = vpop.xlane.xlu0 %681 }
 0x4e3   :  { %v378_v6 = vpop.f32.mrb[12].mxu0 }
 0x4e4   :  { %v385_v60 = vmul.f32 %v2791_v5, %v378_v6  ;;  %v2500_v7 = vpop.f32.mrb[13].mxu0 }
 0x4e5   :  { %v381_v11 = vpop.f32.mrb[14].mxu0  ;;  %v2793_v18 = vpop.eup %2792 }
 0x4e6   :  { %387 = vrot.lane.b32.xlu0 %v385_v60, %s2881_s21  ;;  %v2501_v12 = vpop.f32.mrb[15].mxu0  ;;  %v798_v1 = vpop.xlane.xlu0 %797 }
 0x4ea   :  { %v3358_v19 = vpop.xlane.xlu0 %1371 }
 0x502   :  { %v914_v10 = vpop.xlane.xlu0 %913 }
 0x506   :  { %v1030_v16 = vpop.xlane.xlu0 %1029  ;;  %v1257_v46 = vpop.xlane.xlu1 %1256 }
 0x50a   :  { %v222_v17 = vpop.xlane.xlu0 %221 }
 0x50b   :  { %2794 = vrcp.f32 %v222_v17 }
 0x50c   :  { %2796 = vrcp.f32 %v566_v8 }
 0x50d   :  { %2798 = vrcp.f32 %v682_v14 }
 0x50e   :  { %2800 = vrcp.f32 %v798_v1 }
 0x50f   :  { %2802 = vrcp.f32 %v914_v10 }
 0x510   :  { %v494_v20 = vpop.f32.mrb[16].mxu0  ;;  %2804 = vrcp.f32 %v1030_v16 }
 0x511   :  { %v501_v21 = vmul.f32 %v2793_v18, %v494_v20  ;;  %v2512_v2 = vpop.f32.mrb[17].mxu0  ;;  %v1487_v33 = vpop.xlane.xlu1 %1486 }
 0x512   :  { %v497_v22 = vpop.f32.mrb[18].mxu0 }
 0x513   :  { %503 = vrot.lane.b32.xlu1 %v501_v21, %s2882_s4  ;;  %v2513_v9 = vpop.f32.mrb[19].mxu0 }
 0x515   :  { %v2795_v24 = vpop.eup %2794 }
 0x516   :  { %v274_v25 = vmul.f32 %v2795_v24, %v267_v28  ;;  %v2797_v26 = vpop.eup %2796 }
 0x517   :  { %v2799_v31 = vpop.eup %2798 }
 0x518   :  { %275 = vst.msk [vmem:[#allocation2] sm:$0xff] %vm166_vm2, %v274_v25  ;;  %v610_v30 = vpop.f32.mrb[20].mxu0  ;;  %v2801_v37 = vpop.eup %2800 }
 0x519   :  { %v617_v42 = vmul.f32 %v2797_v26, %v610_v30  ;;  %v2524_v38 = vpop.f32.mrb[21].mxu0  ;;  %v2803_v50 = vpop.eup %2802 }
 0x51a   :  { %v613_v44 = vpop.f32.mrb[22].mxu0  ;;  %v2805_v59 = vpop.eup %2804 }
 0x51b   :  { %619 = vrot.lane.b32.xlu0 %v617_v42, %s2883_s22  ;;  %v2525_v48 = vpop.f32.mrb[23].mxu0 }
 0x520   :  { %v726_v32 = vpop.f32.mrb[24].mxu0 }
 0x521   :  { %v733_v34 = vmul.f32 %v2799_v31, %v726_v32  ;;  %v2536_v35 = vpop.f32.mrb[25].mxu0 }
 0x522   :  { %v729_v36 = vpop.f32.mrb[26].mxu0 }
 0x523   :  { %735 = vrot.lane.b32.xlu0 %v733_v34, %s2884_s23  ;;  %v2537_v52 = vpop.f32.mrb[27].mxu0 }
 0x528   :  { %v842_v27 = vpop.f32.mrb[28].mxu0 }
 0x529   :  { %v849_v41 = vmul.f32 %v2801_v37, %v842_v27  ;;  %v2548_v43 = vpop.f32.mrb[29].mxu0  ;;  %v2742_v27 = vld [vmem:[%s3501_s5] sm:$0xff]  }
 0x52a   :  { %v845_v23 = vpop.f32.mrb[30].mxu0  ;;  %2671 = vmatpush3.bf16.msra.mxu1 %v2742_v27  ;;  %v2373_v27 = vld [vmem:[%s3503_s7] ss:$0 sm:$0xff] }
 0x52b   :  { %851 = vrot.lane.b32.xlu0 %v849_v41, %s2885_s24  ;;  %v2549_v45 = vpop.f32.mrb[31].mxu0  ;;  %v2743_v23 = vld [vmem:[%s3501_s5 + $0x8] sm:$0xff]   ;;  %2672 = vmatprep.subr.bf16.mxu1 %v2856_v15 }
 0x52e   :  { %2673 = vmatpush3.bf16.msra.mxu1 %v2743_v23 }
 0x52f   :  { %2686 = vmatprep.subr.bf16.mxu1 %v2856_v15 }
 0x53b   :  { %v1602_v13 = vpop.xlane.xlu1 %1601 }
 0x53f   :  { %v1717_v47 = vpop.xlane.xlu1 %1716 }
 0x543   :  { %v3365_v49 = vpop.xlane.xlu1 %1831 }
 0x547   :  { %v3367_v40 = vpop.xlane.xlu1 %1946 }
 0x549   :  { %v958_v51 = vpop.f32.mrb[32].mxu0 }
 0x54a   :  { %v965_v53 = vmul.f32 %v2803_v50, %v958_v51  ;;  %v2560_v54 = vpop.f32.mrb[33].mxu0 }
 0x54b   :  { %v961_v55 = vpop.f32.mrb[34].mxu0  ;;  %v1146_v58 = vpop.xlane.xlu1 %1145 }
 0x54c   :  { %967 = vrot.lane.b32.xlu0 %v965_v53, %s2886_s25  ;;  %v2561_v57 = vpop.f32.mrb[35].mxu0  ;;  %2806 = vrcp.f32 %v1146_v58 }
 0x54d   :  { %2808 = vrcp.f32 %v1257_v46 }
 0x54e   :  { %2810 = vrcp.f32 %v3358_v19 }
 0x54f   :  { %2812 = vrcp.f32 %v1487_v33 }
 0x550   :  { %2814 = vrcp.f32 %v1602_v13 }
 0x551   :  { %v1074_v39 = vpop.f32.mrb[36].mxu0  ;;  %2816 = vrcp.f32 %v1717_v47 }
 0x552   :  { %v1081_v61 = vmul.f32 %v2805_v59, %v1074_v39  ;;  %v2572_v62 = vpop.f32.mrb[37].mxu0  ;;  %2818 = vrcp.f32 %v3365_v49 }
 0x553   :  { %v1077_v63 = vpop.f32.mrb[38].mxu0  ;;  %2820 = vrcp.f32 %v3367_v40 }
 0x554   :  { %1083 = vrot.lane.b32.xlu0 %v1081_v61, %s2887_s26  ;;  %v2573_v0 = vpop.f32.mrb[39].mxu0 }
 0x556   :  { %v2807_v28 = vpop.eup %2806 }
 0x557   :  { %v2809_v7 = vpop.eup %2808 }
 0x558   :  { %v388_v3 = vpop.permute.xlu0 %387  ;;  %v2811_v1 = vpop.eup %2810 }
 0x559   :  { %v1190_v29 = vpop.f32.mrb[40].mxu0  ;;  %391 = vst.msk [vmem:[#allocation2] sm:$0xff] %vm390_vm5, %v388_v3  ;;  %v2813_v21 = vpop.eup %2812 }
 0x55a   :  { %v1197_v4 = vmul.f32 %v2807_v28, %v1190_v29  ;;  %v2584_v5 = vpop.f32.mrb[41].mxu0  ;;  %v2815_v25 = vpop.eup %2814 }
 0x55b   :  { %v1193_v6 = vpop.f32.mrb[42].mxu0  ;;  %v2817_v31 = vpop.eup %2816  ;;  %v2369_v5 = vld [vmem:[%s3502_s6] ss:$0 sm:$0xff] }
 0x55c   :  { %1198 = vst.msk [vmem:[#allocation2 + $0x8] sm:$0xff] %vm166_vm2, %v1197_v4  ;;  %v2585_v60 = vpop.f32.mrb[43].mxu0  ;;  %v2819_v41 = vpop.eup %2818 }
 0x55d   :  { %v2821_v49 = vpop.eup %2820 }
 0x561   :  { %v1301_v56 = vpop.f32.mrb[44].mxu0 }
 0x562   :  { %v1308_v11 = vmul.f32 %v2809_v7, %v1301_v56  ;;  %v2596_v12 = vpop.f32.mrb[45].mxu0 }
 0x563   :  { %v1304_v8 = vpop.f32.mrb[46].mxu0 }
 0x564   :  { %1310 = vrot.lane.b32.xlu1 %v1308_v11, %s2881_s21  ;;  %v2597_v14 = vpop.f32.mrb[47].mxu0  ;;  %v2830_v11 = vld [vmem:[%s3496_s0] sm:$0xff] }
 0x569   :  { %v1416_v10 = vpop.f32.mrb[48].mxu0 }
 0x56a   :  { %v1423_v16 = vmul.f32 %v2811_v1, %v1416_v10  ;;  %v2608_v17 = vpop.f32.mrb[49].mxu0  ;;  %v2831_v1 = vld [vmem:[%s3496_s0 + $0x8] sm:$0xff]  ;;  %s2888_s0 = smov [#allocation3]  }
 0x56b   :  { %v1419_v18 = vpop.f32.mrb[50].mxu0  ;;  %s2320_s6 = sshll.u32 %s2888_s0, 4  ;;  %s2321_s6 = int_to_ptr.vmem [resolvable:$true] %s2320_s6 }
 0x56c   :  { %1425 = vrot.lane.b32.xlu1 %v1423_v16, %s2882_s4  ;;  %v2609_v20 = vpop.f32.mrb[51].mxu0  ;;  %s2832_s18 = scalar_lea.vmem %s2321_s6, 256  ;;  %p2837_p1 = scmp.lt.s32.totalorder %s2321_s6, %s2321_s6 }
 0x56d   :  { %p2833_p0 = scmp.ne.s32.totalorder %s2321_s6, %s2832_s18  ;;  %p2838_p2 = scmp.lt.s32.totalorder %s2832_s18, %s2832_s18 }
 0x56f   :  { %p2839_p3 = por %p2838_p2, %p2837_p1 }
 0x571   :  { %v1531_v2 = vpop.f32.mrb[52].mxu0  ;;  %p2840_p4 = pnand %p2839_p3, %p2833_p0 }
 0x572   :  { %v1538_v19 = vmul.f32 %v2813_v21, %v1531_v2  ;;  %v2620_v22 = vpop.f32.mrb[53].mxu0 }
 0x573   :  { %v1534_v9 = vpop.f32.mrb[54].mxu0 }
 0x574   :  { %1540 = vrot.lane.b32.xlu1 %v1538_v19, %s2883_s22  ;;  %v2621_v24 = vpop.f32.mrb[55].mxu0 }
 0x582   :  { %v1646_v26 = vpop.f32.mrb[56].mxu0 }
 0x583   :  { %v1653_v30 = vmul.f32 %v2815_v25, %v1646_v26  ;;  %v2632_v42 = vpop.f32.mrb[57].mxu0 }
 0x584   :  { %v1649_v38 = vpop.f32.mrb[58].mxu0  ;;  %v2745_v42 = vld [vmem:[%s3505_s9 + $0x8] sm:$0xff]  }
 0x585   :  { %1655 = vrot.lane.b32.xlu1 %v1653_v30, %s2884_s23  ;;  %v2633_v44 = vpop.f32.mrb[59].mxu0  ;;  %v504_v48 = vpop.permute.xlu1 %503  ;;  %v2744_v30 = vld [vmem:[%s3505_s9] sm:$0xff]  }
 0x586   :  { %507 = vst.msk [vmem:[#allocation2] sm:$0xff] %vm506_vm6, %v504_v48  ;;  %2679 = vmatpush3.bf16.msra.mxu0 %v2744_v30  ;;  %v2746_v38 = vld [vmem:[%s3507_s11] sm:$0xff]   ;;  %v2747_v44 = vld [vmem:[%s3507_s11 + $0x8] sm:$0xff]  }
 0x587   :  { %2680 = vmatprep.subr.bf16.mxu0 %v2856_v15 }
 0x58a   :  { %v1761_v32 = vpop.f32.mrb[60].mxu0  ;;  %2681 = vmatpush3.bf16.msra.mxu0 %v2745_v42 }
 0x58b   :  { %v1768_v34 = vmul.f32 %v2817_v31, %v1761_v32  ;;  %v2644_v35 = vpop.f32.mrb[61].mxu0 }
 0x58c   :  { %v1764_v36 = vpop.f32.mrb[62].mxu0 }
 0x58d   :  { %1770 = vrot.lane.b32.xlu1 %v1768_v34, %s2885_s24  ;;  %v2645_v52 = vpop.f32.mrb[63].mxu0  ;;  %v620_v37 = vpop.permute.xlu0 %619 }
 0x58e   :  { %623 = vst.msk [vmem:[#allocation2] sm:$0xff] %vm622_vm7, %v620_v37 }
 0x592   :  { %v1876_v43 = vpop.f32.mrb[64].mxu0 }
 0x593   :  { %v1883_v45 = vmul.f32 %v2819_v41, %v1876_v43  ;;  %v2656_v46 = vpop.f32.mrb[65].mxu0 }
 0x594   :  { %v1879_v33 = vpop.f32.mrb[66].mxu0 }
 0x595   :  { %1885 = vrot.lane.b32.xlu1 %v1883_v45, %s2886_s25  ;;  %v2657_v13 = vpop.f32.mrb[67].mxu0  ;;  %v736_v47 = vpop.permute.xlu0 %735  ;;  %v2374_v45 = vld [vmem:[%s3504_s8] ss:$0 sm:$0xff] }
 0x596   :  { %739 = vst.msk [vmem:[#allocation2] sm:$0xff] %vm738_vm8, %v736_v47 }
 0x59a   :  { %v1991_v40 = vpop.f32.mrb[68].mxu0 }
 0x59b   :  { %v1998_v50 = vmul.f32 %v2821_v49, %v1991_v40  ;;  %v2668_v51 = vpop.f32.mrb[69].mxu0  ;;  %v2748_v49 = vld [vmem:[%s3507_s11 + $0x10] sm:$0xff]   ;;  %v2749_v40 = vld [vmem:[%s3507_s11 + $0x18] sm:$0xff]  }
 0x59c   :  { %v1994_v53 = vpop.f32.mrb[70].mxu0  ;;  %v2751_v51 = vld [vmem:[%s3507_s11 + $0x28] sm:$0xff]  }
 0x59d   :  { %2000 = vrot.lane.b32.xlu1 %v1998_v50, %s2887_s26  ;;  %v2669_v54 = vpop.f32.mrb[71].mxu0  ;;  %v852_v55 = vpop.permute.xlu0 %851  ;;  %v2750_v50 = vld [vmem:[%s3507_s11 + $0x20] sm:$0xff]   ;;  %v2752_v53 = vld [vmem:[%s3507_s11 + $0x30] sm:$0xff]  }
 0x59e   :  { %855 = vst.msk [vmem:[#allocation2] sm:$0xff] %vm854_vm9, %v852_v55  ;;  %v2753_v54 = vld [vmem:[%s3507_s11 + $0x38] sm:$0xff]   ;;  %v2375_v55 = vld [vmem:[%s3506_s10] ss:$0 sm:$0xff] }
 0x5be   :  { %v968_v58 = vpop.permute.xlu0 %967 }
 0x5bf   :  { %971 = vst.msk [vmem:[#allocation2] sm:$0xff] %vm970_vm10, %v968_v58 }
 0x5c6   :  { %v1084_v57 = vpop.permute.xlu0 %1083 }
 0x5c7   :  { %1087 = vst.msk [vmem:[#allocation2] sm:$0xff] %vm1086_vm11, %v1084_v57 }
 0x5ce   :  { %v2004_v3 = vld [vmem:[#allocation2] sm:$0xff] }
 0x5d6   :  { %v1311_v59 = vpop.permute.xlu1 %1310 }
 0x5d7   :  { %1313 = vst.msk [vmem:[#allocation2 + $0x8] sm:$0xff] %vm390_vm5, %v1311_v59 }
 0x5de   :  { %v1426_v39 = vpop.permute.xlu1 %1425 }
 0x5df   :  { %1428 = vst.msk [vmem:[#allocation2 + $0x8] sm:$0xff] %vm506_vm6, %v1426_v39 }
 0x5e6   :  { %v1541_v61 = vpop.permute.xlu1 %1540 }
 0x5e7   :  { %1543 = vst.msk [vmem:[#allocation2 + $0x8] sm:$0xff] %vm622_vm7, %v1541_v61 }
 0x5f7   :  { %v1656_v62 = vpop.permute.xlu1 %1655 }
 0x5f8   :  { %1658 = vst.msk [vmem:[#allocation2 + $0x8] sm:$0xff] %vm738_vm8, %v1656_v62 }
 0x5ff   :  { %v1771_v63 = vpop.permute.xlu1 %1770 }
 0x600   :  { %1773 = vst.msk [vmem:[#allocation2 + $0x8] sm:$0xff] %vm854_vm9, %v1771_v63 }
 0x607   :  { %v1886_v0 = vpop.permute.xlu1 %1885 }
 0x608   :  { %1888 = vst.msk [vmem:[#allocation2 + $0x8] sm:$0xff] %vm970_vm10, %v1886_v0 }
 0x60f   :  { %v2001_v28 = vpop.permute.xlu1 %2000 }
 0x610   :  { %2003 = vst.msk [vmem:[#allocation2 + $0x8] sm:$0xff] %vm1086_vm11, %v2001_v28 }
 0x617   :  { %v2005_v29 = vld [vmem:[#allocation2 + $0x8] sm:$0xff] }
 0x618   :  { %v2006_v4 = vpack.c.bf16 %v2005_v29, %v2004_v3 }
 0x61a   :  { %2675 = vmatmul.mubr.msk.bf16.vlgmr.msra.gmra.mrb[60].mxu1 %vm50_vm0, %v2006_v4 }
 0x61b   :  { %2702 = vmatprep.mubr.msk.bf16.mxu1 %vm2857_vm1, %v2856_v15  ;;  %2687 = vmatpush3.bf16.msra.mxu1 %v2746_v38 }
 0x61c   :  { %2688 = vmatprep.subr.bf16.mxu1 %v2856_v15 }
 0x61f   :  { %2689 = vmatpush3.bf16.msra.mxu1 %v2747_v44 }
 0x620   :  { %2690 = vmatprep.subr.bf16.mxu1 %v2856_v15 }
 0x623   :  { %2691 = vmatpush3.bf16.msra.mxu1 %v2748_v49 }
 0x624   :  { %2692 = vmatprep.subr.bf16.mxu1 %v2856_v15 }
 0x627   :  { %2693 = vmatpush3.bf16.msra.mxu1 %v2749_v40 }
 0x628   :  { %2694 = vmatprep.subr.bf16.mxu1 %v2856_v15 }
 0x62b   :  { %2695 = vmatpush3.bf16.msra.mxu1 %v2750_v50 }
 0x62c   :  { %2696 = vmatprep.subr.bf16.mxu1 %v2856_v15 }
 0x62f   :  { %2697 = vmatpush3.bf16.msra.mxu1 %v2751_v51 }
 0x630   :  { %2698 = vmatprep.subr.bf16.mxu1 %v2856_v15 }
 0x633   :  { %2699 = vmatpush3.bf16.msra.mxu1 %v2752_v53 }
 0x634   :  { %2700 = vmatprep.subr.bf16.mxu1 %v2856_v15 }
 0x637   :  { %2701 = vmatpush3.bf16.msra.mxu1 %v2753_v54 }
 0x6ed   :  { %v2067_v6 = vpop.f32.mrb[60].mxu1 }
 0x6ee   :  { %v2068_v60 = vadd.f32 %v2369_v5, %v2067_v6  ;;  %v2676_v7 = vpop.f32.mrb[61].mxu1 }
 0x6ef   :  { %v2070_v56 = vpop.f32.mrb[62].mxu1 }
 0x6f0   :  { %v3413_v12 = vadd.f32 %v2830_v11, %v2068_v60  ;;  %v2071_v8 = vadd.f32 %v2369_v5, %v2070_v56  ;;  %v2677_v14 = vpop.f32.mrb[63].mxu1  ;;  %v2379_v56 = vld [vmem:[%s3508_s12] ss:$0 sm:$0xff] }
 0x6f2   :  { %v3418_v10 = vadd.f32 %v2831_v1, %v2071_v8  ;;  %v2078_v16 = vsel %vm50_vm0, %v3413_v12, 0.0 }
 0x6f3   :  { %2079 = vadd.xlane.f32.xlu0 %v2078_v16 }
 0x6f4   :  { %v2081_v17 = vsel %vm50_vm0, %v3418_v10, 0.0 }
 0x6f5   :  { %2082 = vadd.xlane.f32.xlu1 %v2081_v17 }
 0x780   :  { %v2080_v18 = vpop.xlane.xlu0 %2079 }
 0x781   :  { %v2084_v20 = vmul.f32 0.03125, %v2080_v18 }
 0x782   :  { %v2083_v21 = vpop.xlane.xlu1 %2082 }
 0x783   :  { %v2086_v2 = vsub.f32 %v3413_v12, %v2084_v20  ;;  %v2085_v19 = vmul.f32 0.03125, %v2083_v21 }
 0x785   :  { %v2087_v22 = vsub.f32 %v3418_v10, %v2085_v19  ;;  %v2088_v9 = vmul.f32 %v2086_v2, %v2086_v2 }
 0x787   :  { %v2090_v24 = vsel %vm50_vm0, %v2088_v9, 0.0  ;;  %v2089_v25 = vmul.f32 %v2087_v22, %v2087_v22 }
 0x788   :  { %2091 = vadd.xlane.f32.xlu0 %v2090_v24 }
 0x789   :  { %v2093_v26 = vsel %vm50_vm0, %v2089_v25, 0.0 }
 0x78c   :  { %2094 = vadd.xlane.f32.xlu0 %v2093_v26 }
 0x815   :  { %v2092_v48 = vpop.xlane.xlu0 %2091 }
 0x816   :  { %v2096_v31 = vmul.f32 0.03125, %v2092_v48 }
 0x818   :  { %v2098_v32 = vadd.f32 1e-05, %v2096_v31 }
 0x819   :  { %v2095_v34 = vpop.xlane.xlu0 %2094 }
 0x81a   :  { %2822 = vrsqrt.f32 %v2098_v32  ;;  %v2097_v35 = vmul.f32 0.03125, %v2095_v34 }
 0x81c   :  { %v2099_v36 = vadd.f32 1e-05, %v2097_v35 }
 0x81e   :  { %2824 = vrsqrt.f32 %v2099_v36 }
 0x824   :  { %v2823_v52 = vpop.eup %2822 }
 0x825   :  { %v2102_v37 = vmul.f32 %v2823_v52, %v2086_v2 }
 0x827   :  { %v2110_v43 = vmul.f32 %v2373_v27, %v2102_v37 }
 0x828   :  { %v2825_v41 = vpop.eup %2824 }
 0x829   :  { %v2103_v23 = vmul.f32 %v2825_v41, %v2087_v22  ;;  %v2118_v33 = vadd.f32 %v2374_v45, %v2110_v43 }
 0x82b   :  { %v2111_v46 = vmul.f32 %v2373_v27, %v2103_v23 }
 0x82d   :  { %v2119_v13 = vadd.f32 %v2374_v45, %v2111_v46 }
 0x82f   :  { %v2120_v47 = vpack.c.bf16 %v2119_v13, %v2118_v33 }
 0x831   :  { %2683 = vmatmul.mubr.msk.bf16.vlgmr.msra.gmra.mrb[72].mxu0 %vm50_vm0, %v2120_v47 }
 0x904   :  { %v2181_v58 = vpop.f32.mrb[72].mxu0 }
 0x905   :  { %v2182_v57 = vadd.f32 %v2375_v55, %v2181_v58  ;;  %v2684_v59 = vpop.f32.mrb[73].mxu0 }
 0x906   :  { %v2184_v39 = vpop.f32.mrb[74].mxu0 }
 0x907   :  { %v2190_v61 = vmul.f32 0.70710677, %v2182_v57  ;;  %v2185_v62 = vadd.f32 %v2375_v55, %v2184_v39  ;;  %v2685_v63 = vpop.f32.mrb[75].mxu0  ;;  %v2188_v29 = vmul.f32 0.5, %v2182_v57 }
 0x909   :  { %2826 = verf.f32 %v2190_v61  ;;  %v2191_v0 = vmul.f32 0.70710677, %v2185_v62  ;;  %v2189_v4 = vmul.f32 0.5, %v2185_v62 }
 0x90b   :  { %2828 = verf.f32 %v2191_v0 }
 0x913   :  { %v2827_v15 = vpop.eup %2826 }
 0x914   :  { %v2194_v28 = vadd.f32 1.0, %v2827_v15 }
 0x915   :  { %v2829_v3 = vpop.eup %2828 }
 0x916   :  { %v2195_v5 = vadd.f32 1.0, %v2829_v3  ;;  %v2196_v6 = vmul.f32 %v2194_v28, %v2188_v29 }
 0x918   :  { %v2197_v60 = vmul.f32 %v2195_v5, %v2189_v4 }
 0x91a   :  { %v2198_v7 = vpack.c.bf16 %v2197_v60, %v2196_v6 }
 0x91c   :  { %2703 = vmatmul.mubr.bf16.vlgmr.msra.gmra.mrb[64].mxu1 %v2198_v7 }
 0x9ef   :  { %v2304_v11 = vpop.f32.mrb[64].mxu1 }
 0x9f0   :  { %v2305_v8 = vadd.f32 %v2379_v56, %v2304_v11  ;;  %v2704_v14 = vpop.f32.mrb[65].mxu1 }
 0x9f1   :  { %v2307_v1 = vpop.f32.mrb[66].mxu1 }
 0x9f2   :  { %v2311_v16 = vadd.f32 %v2305_v8, %v3413_v12  ;;  %v2308_v17 = vadd.f32 %v2379_v56, %v2307_v1  ;;  %v2705_v18 = vpop.f32.mrb[67].mxu1 }
 0x9f4   :  { %2313 = vst.msk [vmem:[#allocation3] sm:$0xff] %vm50_vm0, %v2311_v16  ;;  %v2312_v20 = vadd.f32 %v2308_v17, %v3418_v10 }
 0x9f6   :  { %2314 = vst.msk [vmem:[#allocation3 + $0x8] sm:$0xff] %vm50_vm0, %v2312_v20 }
 0x9f7   :  { %2843 = shalt.err (!%p2840_p4)
}
 0x9f8   :  { %s2844_s20 = scalar_lea.hbm %s3509_s13, 256 }
 0x9f9   :  { %p2845_p5 = scmp.ne.s32.totalorder %s3509_s13, %s2844_s20  ;;  %p2848_p6 = scmp.lt.u32.totalorder %s2844_s20, %s3509_s13 }
 0x9fb   :  { %p2850_p7 = pnand %p2848_p6, %p2845_p5 }
 0x9fd   :  { %2853 = shalt.err (!%p2850_p7)
}
 0x9fe   :  { %s2889_s22 = smov 128  }
 0x9ff   :  { %2326 = dma.vmem_to_hbm [thread:$0]  %s2321_s6, 256, %s3509_s13, [#allocation4], %s2889_s22, %s2889_s22, %s2882_s4  }
 0xa00   :  { %2854 = dma.done.wait [#allocation4], 256  }
 0xa01   :  { %2855 = vsyncadd [#allocation4], 4294967040 }
 0xa02   :  { %2330 = vsyncpa [#allocation4], 1 }

</bundles_post_ra>
